<compile_context>
chip_gen: v7x
topology: tpu7x:2x2x1
jax: 0.10.0
libtpu: 0.0.40
codegen_flags: <defaults>
</compile_context>

<pallas_src>
import functools

import jax
import jax.numpy as jnp
from jax.experimental import pallas as pl
from jax.experimental.pallas import tpu as pltpu


def _round_up(x, m):
    return (x + m - 1) // m * m


def _vmem_budget_bytes():
    """Generation-aware scoped-VMEM budget (headroom below physical capacity)."""
    try:
        cap = int(pltpu.get_tpu_info().vmem_capacity_bytes)
    except Exception:
        cap = 64 << 20                      # conservative default (v7x-sized)
    # v5e/v6e (128 MiB physical) -> 96 MiB ; v7x (64 MiB physical) -> 48 MiB
    return min(cap * 3 // 4, 100 << 20)


# ----------------------------------------------------------------------------
# Fused whole-network kernel (all layers, one pallas_call).
# ----------------------------------------------------------------------------
def _gin_fused_kernel(*refs, n_layers, eps, layer_meta):
    # refs layout: [adj_0..adj_{L-1}, x, w_0, b_0, ..., w_{L-1}, b_{L-1}, out]
    adj_refs = refs[:n_layers]
    x_ref = refs[n_layers]
    wb_refs = refs[n_layers + 1: n_layers + 1 + 2 * n_layers]
    out_ref = refs[-1]

    h = x_ref[...]                                         # f32, VMEM resident
    for l in range(n_layers):                              # Python-unrolled over layers
        reassoc, mean_agg, apply_relu = layer_meta[l]
        a = adj_refs[l][...]                               # bf16 straight into the MXU
        w = wb_refs[2 * l][...]                            # f32 (w_ext for mean+reassoc)
        b = wb_refs[2 * l + 1][...]                        # f32 (1, f_out)
        f_out = b.shape[-1]

        if reassoc:
            # Project first (narrower N^2 contraction), then aggregate:
            #   ((1+eps)H + D^-1 A H) W + b == (1+eps)(HW) + D^-1 A (HW) + b
            hw = jnp.dot(h, w, preferred_element_type=jnp.float32)
            if mean_agg:
                # w carries an extra all-zero column; turn it into a ones column so
                # the adjacency matmul also produces the in-degree (free MXU lanes).
                col = jax.lax.broadcasted_iota(jnp.int32, hw.shape, 1)
                hw = hw + jnp.where(col == f_out, 1.0, 0.0)
            agg = jnp.dot(a, hw.astype(jnp.bfloat16),
                          preferred_element_type=jnp.float32)
            if mean_agg:
                deg = agg[:, f_out:f_out + 1]
                inv = jnp.where(deg > 0.5,
                                pl.reciprocal(jnp.maximum(deg, 1.0), approx=True),
                                0.0)
                agg = agg[:, :f_out] * inv
                hw = hw[:, :f_out]
            h_new = (hw + agg) if eps == 0.0 else ((1.0 + eps) * hw + agg)
            h_new = h_new + b
        else:
            agg = jnp.dot(a, h.astype(jnp.bfloat16),
                          preferred_element_type=jnp.float32)
            if mean_agg:   # not hit in the demo config (mean layer reassociates)
                ones = jnp.ones((a.shape[1], 1), jnp.bfloat16)
                deg = jnp.dot(a, ones, preferred_element_type=jnp.float32)
                inv = jnp.where(deg > 0.5,
                                pl.reciprocal(jnp.maximum(deg, 1.0), approx=True),
                                0.0)
                agg = agg * inv
            z = (h + agg) if eps == 0.0 else ((1.0 + eps) * h + agg)
            h_new = jnp.dot(z, w, preferred_element_type=jnp.float32) + b
        if apply_relu:
            h_new = jnp.maximum(h_new, 0.0)
        h = h_new
    # TODO(synk): pipeline the per-layer A@H over dst-row tiles (pltpu.emit_pipeline)
    # to hide the exposed grid=(1,) input DMA at larger fused sizes.
    out_ref[...] = h.astype(out_ref.dtype)


def gin_forward_fused(blocks_bf16, x, params, *, eps=0.0, vmem_limit=None):
    """Whole GIN forward in a single pallas_call (everything VMEM-resident)."""
    n_layers = len(params)
    n_dst = blocks_bf16[0].shape[0]
    f_out_last = params[-1][0].shape[1]

    layer_meta = []
    flat_wb = []
    for l, (w, b) in enumerate(params):
        f_in, f_out = w.shape
        reassoc = f_out < f_in
        mean_agg = (l == n_layers - 1)          # last GINConv aggregates with 'mean'
        apply_relu = (l != n_layers - 1)
        layer_meta.append((reassoc, mean_agg, apply_relu))
        w_f = w.astype(jnp.float32)
        if reassoc and mean_agg:
            # extra zero column -> the kernel turns it into a ones column so the same
            # adjacency matmul also yields the degree.
            w_f = jnp.concatenate([w_f, jnp.zeros((f_in, 1), jnp.float32)], axis=1)
        flat_wb.append(w_f)
        flat_wb.append(b.reshape(1, -1).astype(jnp.float32))

    in_specs = (
        [pl.BlockSpec(a.shape, lambda i: (0, 0)) for a in blocks_bf16]
        + [pl.BlockSpec(x.shape, lambda i: (0, 0))]
        + [pl.BlockSpec(t.shape, lambda i: (0, 0)) for t in flat_wb]
    )

    kern = functools.partial(_gin_fused_kernel, n_layers=n_layers, eps=eps,
                             layer_meta=tuple(layer_meta))
    return pl.pallas_call(
        kern,
        out_shape=jax.ShapeDtypeStruct((n_dst, f_out_last), jnp.float32),
        grid_spec=pltpu.PrefetchScalarGridSpec(
            num_scalar_prefetch=0,
            grid=(1,),
            in_specs=in_specs,
            out_specs=pl.BlockSpec((n_dst, f_out_last), lambda i: (0, 0)),
        ),
        compiler_params=pltpu.CompilerParams(
            dimension_semantics=("arbitrary",),
            vmem_limit_bytes=vmem_limit),
    )(*blocks_bf16, x.astype(jnp.float32), *flat_wb)


# ----------------------------------------------------------------------------
# Per-layer kernel, tiled over destination nodes AND source (reduction) nodes.
# ----------------------------------------------------------------------------
def _gin_layer_tiled_kernel(a_ref, src_ref, self_ref, w_ref, b_ref, out_ref, acc_ref,
                            *, eps, mean_agg, apply_relu, reassoc):
    k = pl.program_id(1)

    @pl.when(k == 0)
    def _():
        acc_ref[...] = jnp.zeros_like(acc_ref)

    # bf16 adjacency tile x bf16 feature tile -> f32 accumulator (MXU).
    acc_ref[...] += jnp.dot(a_ref[...], src_ref[...],
                            preferred_element_type=jnp.float32)

    @pl.when(k == pl.num_programs(1) - 1)
    def _():
        acc = acc_ref[...]
        if mean_agg:
            f_val = acc.shape[-1] - 1                      # last column is the degree
            deg = acc[:, f_val:f_val + 1]
            inv = jnp.where(deg > 0.5,
                            pl.reciprocal(jnp.maximum(deg, 1.0), approx=True),
                            0.0)
            agg = acc[:, :f_val] * inv
        else:
            agg = acc
        h_self = self_ref[...]                             # f32 self term (h or hW)
        z = (h_self + agg) if eps == 0.0 else ((1.0 + eps) * h_self + agg)
        if reassoc:
            out = z + b_ref[...]                           # projection already hoisted
        else:
            out = jnp.dot(z, w_ref[...], preferred_element_type=jnp.float32) + b_ref[...]
        if apply_relu:
            out = jnp.maximum(out, 0.0)
        out_ref[...] = out.astype(out_ref.dtype)


def gin_conv_layer_tiled(adj_bf16, h, w, b, *, eps=0.0, mean_agg=False,
                         apply_relu=False, tile_n=512, tile_k=512, vmem_limit=None):
    """One fused GINConv + Linear (+ ReLU), tiled over dst nodes and src nodes.

    adj_bf16 : [N_dst, N_src] dense 0/1 adjacency, bf16 (conversion cached by caller)
    h        : [N_src, F_in] node features (dst nodes are the first N_dst src nodes)
    w        : [F_in, F_out]   (already transposed from torch's [F_out, F_in])
    b        : [F_out]
    """
    n_dst, n_src = adj_bf16.shape
    f_in, f_out = w.shape
    reassoc = f_out < f_in

    tile_n = min(tile_n, _round_up(n_dst, 128))
    tile_k = min(tile_k, _round_up(n_src, 128))
    n_dst_p = _round_up(n_dst, tile_n)
    n_src_p = _round_up(n_src, tile_k)

    h32 = h.astype(jnp.float32)
    w32 = w.astype(jnp.float32)

    # Hoisted projection / streamed source operand (computed ONCE per layer, not per tile).
    if reassoc:
        hw = jnp.dot(h32, w32, preferred_element_type=jnp.float32)   # [N_src, F_out]
        src = hw
        self_feat = hw[:n_dst]
    else:
        src = h32
        self_feat = h32[:n_dst]
    if mean_agg:
        # ones column -> the adjacency matmul also produces the in-degree.
        src = jnp.concatenate([src, jnp.ones((n_src, 1), jnp.float32)], axis=1)
    f_src = src.shape[1]
    f_self = self_feat.shape[1]

    # Zero-pad to tile multiples (padded rows/cols contribute nothing; sliced off below).
    if n_dst_p != n_dst or n_src_p != n_src:
        adj_bf16 = jnp.pad(adj_bf16, ((0, n_dst_p - n_dst), (0, n_src_p - n_src)))
    if n_src_p != n_src:
        src = jnp.pad(src, ((0, n_src_p - n_src), (0, 0)))
    if n_dst_p != n_dst:
        self_feat = jnp.pad(self_feat, ((0, n_dst_p - n_dst), (0, 0)))

    src_bf16 = src.astype(jnp.bfloat16)
    b2 = b.reshape(1, f_out).astype(jnp.float32)

    kern = functools.partial(_gin_layer_tiled_kernel, eps=eps, mean_agg=mean_agg,
                             apply_relu=apply_relu, reassoc=reassoc)
    out = pl.pallas_call(
        kern,
        out_shape=jax.ShapeDtypeStruct((n_dst_p, f_out), jnp.float32),
        grid_spec=pltpu.PrefetchScalarGridSpec(
            num_scalar_prefetch=0,
            grid=(n_dst_p // tile_n, n_src_p // tile_k),   # reduction (src) axis last
            in_specs=[
                pl.BlockSpec((tile_n, tile_k), lambda i, k: (i, k)),  # adjacency stream (bf16)
                pl.BlockSpec((tile_k, f_src), lambda i, k: (k, 0)),   # src features (bf16)
                pl.BlockSpec((tile_n, f_self), lambda i, k: (i, 0)),  # self term (f32)
                pl.BlockSpec((f_in, f_out), lambda i, k: (0, 0)),     # W (unused if reassoc)
                pl.BlockSpec((1, f_out), lambda i, k: (0, 0)),        # bias
            ],
            out_specs=pl.BlockSpec((tile_n, f_out), lambda i, k: (i, 0)),
            scratch_shapes=[pltpu.VMEM((tile_n, f_src), jnp.float32)],
        ),
        compiler_params=pltpu.CompilerParams(
            dimension_semantics=("parallel", "arbitrary"),
            vmem_limit_bytes=vmem_limit),
    )(adj_bf16, src_bf16, self_feat, w32, b2)
    return out[:n_dst]


# ----------------------------------------------------------------------------
# Model wrapper (forward pass, eval mode).
# ----------------------------------------------------------------------------
class GINPallas:
    """JAX/Pallas equivalent of the torch GIN module's forward (eval mode)."""

    def __init__(self, in_feats, n_hidden, n_classes, n_layers, key):
        self.n_layers = n_layers
        dims = [in_feats] + [n_hidden] * (n_layers - 1) + [n_classes]
        self.params = []
        for l in range(n_layers):
            f_in, f_out = dims[l], dims[l + 1]
            key, wk, bk = jax.random.split(key, 3)
            bound = 1.0 / float(f_in) ** 0.5
            # deterministic synthetic init (same distribution family as nn.Linear)
            w = jax.random.uniform(wk, (f_in, f_out), jnp.float32, -bound, bound)
            b = jax.random.uniform(bk, (f_out,), jnp.float32, -bound, bound)
            self.params.append((w, b))
        self._vmem_budget = _vmem_budget_bytes()
        # TODO(synk): training-mode dropout omitted (identity in eval / p=0).

    @staticmethod
    def prepare_blocks(blocks):
        """Cast dense 0/1 adjacencies to bf16 ONCE (exact); cache outside the forward."""
        return [a.astype(jnp.bfloat16) for a in blocks]

    def _fused_vmem_estimate(self, blocks_bf16, x):
        n_src = x.shape[0]
        adj = sum(2 * a.shape[0] * a.shape[1] for a in blocks_bf16)   # bf16 bytes
        need = 2 * adj                                                # BlockSpec double-buffering
        need += 2 * x.shape[0] * x.shape[1] * 4                       # x (double-buffered)
        fmax = max(max(w.shape) for w, _ in self.params)
        need += 4 * n_src * (fmax + 1) * 4                            # live h / hw / agg copies
        need += 1 << 20                                               # weights, biases, slack
        return need

    def forward(self, blocks, x, *, fuse=None):
        # blocks: dense [N_dst, N_src] 0/1 adjacencies; pass bf16 (prepare_blocks) so no
        # per-call N^2 cast traffic is added in the wrapper.
        blocks = [a if a.dtype == jnp.bfloat16 else a.astype(jnp.bfloat16) for a in blocks]
        if fuse is None:
            fuse = self._fused_vmem_estimate(blocks, x) < self._vmem_budget
            # TODO(synk): on multi-TensorCore chips (v7x) prefer the tiled path at medium N
            # so both cores are used; the fused grid=(1,) path runs on a single core.
        if fuse:
            return gin_forward_fused(blocks, x, self.params, eps=0.0,
                                     vmem_limit=self._vmem_budget)
        h = x
        for l, ((w, b), adj) in enumerate(zip(self.params, blocks)):
            last = (l == self.n_layers - 1)
            h = gin_conv_layer_tiled(adj, h, w, b, eps=0.0,
                                     mean_agg=last,           # last GINConv uses 'mean'
                                     apply_relu=not last,     # activation fused otherwise
                                     vmem_limit=self._vmem_budget)
        return h


def ref_forward(blocks, x, params, n_layers):
    """Pure-JAX (f32) reference of the same forward pass."""
    h = x
    for l, ((w, b), adj) in enumerate(zip(params, blocks)):
        adj = adj.astype(jnp.float32)
        agg = adj @ h
        if l == n_layers - 1:
            deg = adj.sum(axis=1, keepdims=True)
            agg = jnp.where(deg > 0, agg / jnp.maximum(deg, 1.0), 0.0)
        h = h[:adj.shape[0]] + agg         # (1 + eps) * h_dst + agg, eps = 0
        h = h @ w + b
        if l != n_layers - 1:
            h = jnp.maximum(h, 0.0)
    return h


if __name__ == "__main__":
    N = 256            # number of nodes
    in_feats = 16
    n_hidden = 32
    n_classes = 8
    n_layers = 3

    key = jax.random.PRNGKey(0)
    key, xk, mk = jax.random.split(key, 3)

    x = jax.random.normal(xk, (N, in_feats), jnp.float32)
    # one dense adjacency ("block") per layer, directed, ~10% density
    blocks_f32 = []
    for _ in range(n_layers):
        mk, sk = jax.random.split(mk)
        blocks_f32.append((jax.random.uniform(sk, (N, N)) < 0.1).astype(jnp.float32))

    model = GINPallas(in_feats, n_hidden, n_classes, n_layers, key)
    blocks = GINPallas.prepare_blocks(blocks_f32)     # bf16 adjacency, converted ONCE

    ref = ref_forward(blocks_f32, x, model.params, n_layers)
    ref_scale = jnp.maximum(jnp.max(jnp.abs(ref)), 1.0)

    # Fused whole-network path (used at benchmark scale).
    out_fused = jax.block_until_ready(model.forward(blocks, x, fuse=True))
    assert out_fused.shape == (N, n_classes)
    err_f = float(jnp.max(jnp.abs(out_fused - ref)) / ref_scale)
    assert err_f < 2e-2, f"fused path mismatch: normalized err {err_f}"

    # Per-layer K-tiled path (scalable fallback) — exercised for coverage.
    out_tiled = jax.block_until_ready(model.forward(blocks, x, fuse=False))
    assert out_tiled.shape == (N, n_classes)
    err_t = float(jnp.max(jnp.abs(out_tiled - ref)) / ref_scale)
    assert err_t < 2e-2, f"tiled path mismatch: normalized err {err_t}"

    print("KERNEL_OK")
</pallas_src>

<mosaic_0001>
module attributes {stable_mosaic.version = 11 : i64} {
  func.func @_gin_fused_kernel(%arg0: i32, %arg1: memref<256x256xbf16, #tpu.memory_space<vmem>>, %arg2: memref<256x256xbf16, #tpu.memory_space<vmem>>, %arg3: memref<256x256xbf16, #tpu.memory_space<vmem>>, %arg4: memref<256x16xf32, #tpu.memory_space<vmem>>, %arg5: memref<16x32xf32, #tpu.memory_space<vmem>>, %arg6: memref<1x32xf32, #tpu.memory_space<vmem>>, %arg7: memref<32x32xf32, #tpu.memory_space<vmem>>, %arg8: memref<1x32xf32, #tpu.memory_space<vmem>>, %arg9: memref<32x9xf32, #tpu.memory_space<vmem>>, %arg10: memref<1x8xf32, #tpu.memory_space<vmem>>, %arg11: memref<256x8xf32, #tpu.memory_space<vmem>>) attributes {dimension_semantics = [#tpu.dimension_semantics<arbitrary>], iteration_bounds = array<i64: 1>, scalar_prefetch = 0 : i64, scratch_operands = 0 : i64, tpu.core_type = #tpu.core_type<tc>, window_params = [{pipeline_mode = #tpu.pipeline_mode<synchronous>, transform_indices = @transform_0, window_bounds = array<i64: 256, 256>}, {pipeline_mode = #tpu.pipeline_mode<synchronous>, transform_indices = @transform_1, window_bounds = array<i64: 256, 256>}, {pipeline_mode = #tpu.pipeline_mode<synchronous>, transform_indices = @transform_2, window_bounds = array<i64: 256, 256>}, {pipeline_mode = #tpu.pipeline_mode<synchronous>, transform_indices = @transform_3, window_bounds = array<i64: 256, 16>}, {pipeline_mode = #tpu.pipeline_mode<synchronous>, transform_indices = @transform_4, window_bounds = array<i64: 16, 32>}, {pipeline_mode = #tpu.pipeline_mode<synchronous>, transform_indices = @transform_5, window_bounds = array<i64: 1, 32>}, {pipeline_mode = #tpu.pipeline_mode<synchronous>, transform_indices = @transform_6, window_bounds = array<i64: 32, 32>}, {pipeline_mode = #tpu.pipeline_mode<synchronous>, transform_indices = @transform_7, window_bounds = array<i64: 1, 32>}, {pipeline_mode = #tpu.pipeline_mode<synchronous>, transform_indices = @transform_8, window_bounds = array<i64: 32, 9>}, {pipeline_mode = #tpu.pipeline_mode<synchronous>, transform_indices = @transform_9, window_bounds = array<i64: 1, 8>}, {pipeline_mode = #tpu.pipeline_mode<synchronous>, transform_indices = @transform_10, window_bounds = array<i64: 256, 8>}]} {
    %c0 = arith.constant 0 : index
    %c0_0 = arith.constant 0 : index
    %0 = vector.load %arg4[%c0, %c0_0] : memref<256x16xf32, #tpu.memory_space<vmem>>, vector<256x16xf32>
    %c0_1 = arith.constant 0 : index
    %c0_2 = arith.constant 0 : index
    %1 = vector.load %arg1[%c0_1, %c0_2] : memref<256x256xbf16, #tpu.memory_space<vmem>>, vector<256x256xbf16>
    %c0_3 = arith.constant 0 : index
    %c0_4 = arith.constant 0 : index
    %2 = vector.load %arg5[%c0_3, %c0_4] : memref<16x32xf32, #tpu.memory_space<vmem>>, vector<16x32xf32>
    %c0_5 = arith.constant 0 : index
    %c0_6 = arith.constant 0 : index
    %3 = vector.load %arg6[%c0_5, %c0_6] : memref<1x32xf32, #tpu.memory_space<vmem>>, vector<1x32xf32>
    %4 = arith.truncf %0 : vector<256x16xf32> to vector<256x16xbf16>
    %cst = arith.constant dense<0.000000e+00> : vector<256x16xf32>
    %5 = tpu.matmul %1, %4, %cst {dimension_numbers = #tpu.dot_dimension_numbers<[1], [0], [0], [1], [0, 0, 1, 1], [], []>} : vector<256x256xbf16>, vector<256x16xbf16>, vector<256x16xf32> -> vector<256x16xf32>
    %6 = arith.addf %0, %5 : vector<256x16xf32>
    %cst_7 = arith.constant dense<0.000000e+00> : vector<256x32xf32>
    %7 = tpu.matmul %6, %2, %cst_7 {dimension_numbers = #tpu.dot_dimension_numbers<[1], [0], [0], [1], [0, 0, 1, 1], [], []>} : vector<256x16xf32>, vector<16x32xf32>, vector<256x32xf32> -> vector<256x32xf32>
    %8 = vector.broadcast %3 : vector<1x32xf32> to vector<256x32xf32>
    %9 = arith.addf %7, %8 : vector<256x32xf32>
    %cst_8 = arith.constant 0.000000e+00 : f32
    %10 = vector.broadcast %cst_8 : f32 to vector<256x32xf32>
    %11 = arith.maximumf %9, %10 : vector<256x32xf32>
    %c0_9 = arith.constant 0 : index
    %c0_10 = arith.constant 0 : index
    %12 = vector.load %arg2[%c0_9, %c0_10] : memref<256x256xbf16, #tpu.memory_space<vmem>>, vector<256x256xbf16>
    %c0_11 = arith.constant 0 : index
    %c0_12 = arith.constant 0 : index
    %13 = vector.load %arg7[%c0_11, %c0_12] : memref<32x32xf32, #tpu.memory_space<vmem>>, vector<32x32xf32>
    %c0_13 = arith.constant 0 : index
    %c0_14 = arith.constant 0 : index
    %14 = vector.load %arg8[%c0_13, %c0_14] : memref<1x32xf32, #tpu.memory_space<vmem>>, vector<1x32xf32>
    %15 = arith.truncf %11 : vector<256x32xf32> to vector<256x32xbf16>
    %cst_15 = arith.constant dense<0.000000e+00> : vector<256x32xf32>
    %16 = tpu.matmul %12, %15, %cst_15 {dimension_numbers = #tpu.dot_dimension_numbers<[1], [0], [0], [1], [0, 0, 1, 1], [], []>} : vector<256x256xbf16>, vector<256x32xbf16>, vector<256x32xf32> -> vector<256x32xf32>
    %17 = arith.addf %11, %16 : vector<256x32xf32>
    %cst_16 = arith.constant dense<0.000000e+00> : vector<256x32xf32>
    %18 = tpu.matmul %17, %13, %cst_16 {dimension_numbers = #tpu.dot_dimension_numbers<[1], [0], [0], [1], [0, 0, 1, 1], [], []>} : vector<256x32xf32>, vector<32x32xf32>, vector<256x32xf32> -> vector<256x32xf32>
    %19 = vector.broadcast %14 : vector<1x32xf32> to vector<256x32xf32>
    %20 = arith.addf %18, %19 : vector<256x32xf32>
    %cst_17 = arith.constant 0.000000e+00 : f32
    %21 = vector.broadcast %cst_17 : f32 to vector<256x32xf32>
    %22 = arith.maximumf %20, %21 : vector<256x32xf32>
    %c0_18 = arith.constant 0 : index
    %c0_19 = arith.constant 0 : index
    %23 = vector.load %arg3[%c0_18, %c0_19] : memref<256x256xbf16, #tpu.memory_space<vmem>>, vector<256x256xbf16>
    %c0_20 = arith.constant 0 : index
    %c0_21 = arith.constant 0 : index
    %24 = vector.load %arg9[%c0_20, %c0_21] : memref<32x9xf32, #tpu.memory_space<vmem>>, vector<32x9xf32>
    %c0_22 = arith.constant 0 : index
    %c0_23 = arith.constant 0 : index
    %25 = vector.load %arg10[%c0_22, %c0_23] : memref<1x8xf32, #tpu.memory_space<vmem>>, vector<1x8xf32>
    %cst_24 = arith.constant dense<0.000000e+00> : vector<256x9xf32>
    %26 = tpu.matmul %22, %24, %cst_24 {dimension_numbers = #tpu.dot_dimension_numbers<[1], [0], [0], [1], [0, 0, 1, 1], [], []>} : vector<256x32xf32>, vector<32x9xf32>, vector<256x9xf32> -> vector<256x9xf32>
    %27 = tpu.iota {dimensions = array<i32: 1>} : vector<256x9xi32>
    %c8_i32 = arith.constant 8 : i32
    %28 = vector.broadcast %c8_i32 : i32 to vector<256x9xi32>
    %29 = arith.cmpi eq, %27, %28 : vector<256x9xi32>
    %cst_25 = arith.constant 1.000000e+00 : f32
    %cst_26 = arith.constant 0.000000e+00 : f32
    %30 = vector.broadcast %cst_25 : f32 to vector<256x9xf32>
    %31 = vector.broadcast %cst_26 : f32 to vector<256x9xf32>
    %32 = arith.select %29, %30, %31 : vector<256x9xi1>, vector<256x9xf32>
    %33 = arith.addf %26, %32 : vector<256x9xf32>
    %34 = arith.truncf %33 : vector<256x9xf32> to vector<256x9xbf16>
    %cst_27 = arith.constant dense<0.000000e+00> : vector<256x9xf32>
    %35 = tpu.matmul %23, %34, %cst_27 {dimension_numbers = #tpu.dot_dimension_numbers<[1], [0], [0], [1], [0, 0, 1, 1], [], []>} : vector<256x256xbf16>, vector<256x9xbf16>, vector<256x9xf32> -> vector<256x9xf32>
    %36 = vector.extract_strided_slice %35 {offsets = [0, 8], sizes = [256, 1], strides = [1, 1]} : vector<256x9xf32> to vector<256x1xf32>
    %cst_28 = arith.constant 5.000000e-01 : f32
    %37 = vector.broadcast %cst_28 : f32 to vector<256x1xf32>
    %38 = arith.cmpf ogt, %36, %37 : vector<256x1xf32>
    %cst_29 = arith.constant 1.000000e+00 : f32
    %39 = vector.broadcast %cst_29 : f32 to vector<256x1xf32>
    %40 = arith.maximumf %36, %39 : vector<256x1xf32>
    %41 = tpu.reciprocal %40 {approx = true} : vector<256x1xf32> -> vector<256x1xf32>
    %cst_30 = arith.constant 0.000000e+00 : f32
    %42 = vector.broadcast %cst_30 : f32 to vector<256x1xf32>
    %43 = arith.select %38, %41, %42 : vector<256x1xi1>, vector<256x1xf32>
    %44 = vector.extract_strided_slice %35 {offsets = [0, 0], sizes = [256, 8], strides = [1, 1]} : vector<256x9xf32> to vector<256x8xf32>
    %45 = vector.broadcast %43 : vector<256x1xf32> to vector<256x8xf32>
    %46 = arith.mulf %44, %45 : vector<256x8xf32>
    %47 = vector.extract_strided_slice %33 {offsets = [0, 0], sizes = [256, 8], strides = [1, 1]} : vector<256x9xf32> to vector<256x8xf32>
    %48 = arith.addf %47, %46 : vector<256x8xf32>
    %49 = vector.broadcast %25 : vector<1x8xf32> to vector<256x8xf32>
    %50 = arith.addf %48, %49 : vector<256x8xf32>
    %c0_31 = arith.constant 0 : index
    %c0_32 = arith.constant 0 : index
    %51 = vector.load %arg11[%c0_31, %c0_32] : memref<256x8xf32, #tpu.memory_space<vmem>>, vector<256x8xf32>
    tpu.vector_store %arg11[%c0_31, %c0_32], %50 {strides = array<i32>} : memref<256x8xf32, #tpu.memory_space<vmem>>, vector<256x8xf32>,
    return
  }
  func.func @transform_0(%arg0: i32) -> (i32, i32) {
    %c0_i32 = arith.constant 0 : i32
    %c0_i32_0 = arith.constant 0 : i32
    %c0_i32_1 = arith.constant 0 : i32
    return %c0_i32, %c0_i32_0 : i32, i32
  }
  func.func @transform_1(%arg0: i32) -> (i32, i32) {
    %c0_i32 = arith.constant 0 : i32
    %c0_i32_0 = arith.constant 0 : i32
    %c0_i32_1 = arith.constant 0 : i32
    return %c0_i32, %c0_i32_0 : i32, i32
  }
  func.func @transform_2(%arg0: i32) -> (i32, i32) {
    %c0_i32 = arith.constant 0 : i32
    %c0_i32_0 = arith.constant 0 : i32
    %c0_i32_1 = arith.constant 0 : i32
    return %c0_i32, %c0_i32_0 : i32, i32
  }
  func.func @transform_3(%arg0: i32) -> (i32, i32) {
    %c0_i32 = arith.constant 0 : i32
    %c0_i32_0 = arith.constant 0 : i32
    %c0_i32_1 = arith.constant 0 : i32
    return %c0_i32, %c0_i32_0 : i32, i32
  }
  func.func @transform_4(%arg0: i32) -> (i32, i32) {
    %c0_i32 = arith.constant 0 : i32
    %c0_i32_0 = arith.constant 0 : i32
    %c0_i32_1 = arith.constant 0 : i32
    return %c0_i32, %c0_i32_0 : i32, i32
  }
  func.func @transform_5(%arg0: i32) -> (i32, i32) {
    %c0_i32 = arith.constant 0 : i32
    %c0_i32_0 = arith.constant 0 : i32
    %c0_i32_1 = arith.constant 0 : i32
    return %c0_i32, %c0_i32_0 : i32, i32
  }
  func.func @transform_6(%arg0: i32) -> (i32, i32) {
    %c0_i32 = arith.constant 0 : i32
    %c0_i32_0 = arith.constant 0 : i32
    %c0_i32_1 = arith.constant 0 : i32
    return %c0_i32, %c0_i32_0 : i32, i32
  }
  func.func @transform_7(%arg0: i32) -> (i32, i32) {
    %c0_i32 = arith.constant 0 : i32
    %c0_i32_0 = arith.constant 0 : i32
    %c0_i32_1 = arith.constant 0 : i32
    return %c0_i32, %c0_i32_0 : i32, i32
  }
  func.func @transform_8(%arg0: i32) -> (i32, i32) {
    %c0_i32 = arith.constant 0 : i32
    %c0_i32_0 = arith.constant 0 : i32
    %c0_i32_1 = arith.constant 0 : i32
    return %c0_i32, %c0_i32_0 : i32, i32
  }
  func.func @transform_9(%arg0: i32) -> (i32, i32) {
    %c0_i32 = arith.constant 0 : i32
    %c0_i32_0 = arith.constant 0 : i32
    %c0_i32_1 = arith.constant 0 : i32
    return %c0_i32, %c0_i32_0 : i32, i32
  }
  func.func @transform_10(%arg0: i32) -> (i32, i32) {
    %c0_i32 = arith.constant 0 : i32
    %c0_i32_0 = arith.constant 0 : i32
    %c0_i32_1 = arith.constant 0 : i32
    return %c0_i32, %c0_i32_0 : i32, i32
  }
}

</mosaic_0001>

<bundles_post_ra>
// kernel: tpu_custom_call.1
= control target key start
LH: loop header
LB: loop body
LE: loop exit
PB: predicated region body
PF: predicated region fallthrough
CT: control target
= control target key end

     0   :  { %15 = vsyncpa [#allocation3], 0  ;;  %s5215_s0 = inlined_call_operand.vmem [shape: bf16[256,256], index: 0, kind: input, shape index: {}]   ;;  %s5216_s1 = inlined_call_operand.hbm [shape: bf16[256,256], index: 1, kind: input, shape index: {}]   ;;  %s5217_s2 = inlined_call_operand.hbm [shape: bf16[256,256], index: 2, kind: input, shape index: {}]   ;;  %s5218_s3 = inlined_call_operand.vmem [shape: f32[256,16], index: 3, kind: input, shape index: {}]   ;;  %s5219_s4 = inlined_call_operand.vmem [shape: f32[16,32], index: 4, kind: input, shape index: {}]   ;;  %s5220_s5 = inlined_call_operand.vmem [shape: f32[1,32], index: 5, kind: input, shape index: {}]   ;;  %s5221_s6 = inlined_call_operand.vmem [shape: f32[32,32], index: 6, kind: input, shape index: {}]   ;;  %s5222_s7 = inlined_call_operand.vmem [shape: f32[1,32], index: 7, kind: input, shape index: {}]   ;;  %s5223_s8 = inlined_call_operand.vmem [shape: f32[32,9], index: 8, kind: input, shape index: {}]   ;;  %s5224_s9 = inlined_call_operand.vmem [shape: f32[1,8], index: 9, kind: input, shape index: {}]   ;;  %s5225_s10 = inlined_call_operand.vmem [shape: f32[256,8], index: 10, kind: output, shape index: {}]  }
   0x1   :  { %16 = vsyncpa [#allocation5], 0  ;;  %s3855_s13 = smov [#allocation2]   ;;  %s3807_s17 = scalar_lea.hbm %s5216_s1, 4096 }
   0x2   :  { %s24_s14 = sshll.u32 %s3855_s13, 4  ;;  %p3808_p0 = scmp.ne.s32.totalorder %s5216_s1, %s3807_s17  ;;  %s25_s14 = int_to_ptr.vmem [resolvable:$true] %s24_s14 }
   0x3   :  { %p3811_p1 = scmp.lt.u32.totalorder %s3807_s17, %s5216_s1 }
   0x5   :  { %p3813_p2 = pnand %p3811_p1, %p3808_p0 }
   0x7   :  { %3816 = shalt.err (!%p3813_p2)
}
   0x8   :  { %s3817_s22 = scalar_lea.vmem %s25_s14, 4096  ;;  %p3822_p4 = scmp.lt.s32.totalorder %s25_s14, %s25_s14 }
   0x9   :  { %p3818_p3 = scmp.ne.s32.totalorder %s25_s14, %s3817_s22  ;;  %p3823_p5 = scmp.lt.s32.totalorder %s3817_s22, %s3817_s22 }
   0xb   :  { %p3824_p6 = por %p3823_p5, %p3822_p4 }
   0xd   :  { %p3825_p7 = pnand %p3824_p6, %p3818_p3 }
   0xf   :  { %3828 = shalt.err (!%p3825_p7)
}
  0x10   :  { %s3856_s23 = smov 128   ;;  %s3857_s24 = smov 8  }
  0x11   :  { %30 = dma.hbm_to_vmem [thread:$0]  %s5216_s1, 4096, %s25_s14, [#allocation3], %s3856_s23, %s3856_s23, %s3857_s24  }
  0x12   :  { %s3858_s27 = smov [#allocation4]   ;;  %s3829_s11 = scalar_lea.hbm %s5217_s2, 4096 }
  0x13   :  { %s36_s28 = sshll.u32 %s3858_s27, 4  ;;  %p3830_p8 = scmp.ne.s32.totalorder %s5217_s2, %s3829_s11  ;;  %s37_s28 = int_to_ptr.vmem [resolvable:$true] %s36_s28 }
  0x14   :  { %p3833_p9 = scmp.lt.u32.totalorder %s3829_s11, %s5217_s2 }
  0x16   :  { %p3835_p10 = pnand %p3833_p9, %p3830_p8 }
  0x18   :  { %3838 = shalt.err (!%p3835_p10)
}
  0x19   :  { %s3839_s17 = scalar_lea.vmem %s37_s28, 4096  ;;  %p3844_p12 = scmp.lt.s32.totalorder %s37_s28, %s37_s28 }
  0x1a   :  { %p3840_p11 = scmp.ne.s32.totalorder %s37_s28, %s3839_s17  ;;  %p3845_p13 = scmp.lt.s32.totalorder %s3839_s17, %s3839_s17 }
  0x1c   :  { %p3846_p0 = por %p3845_p13, %p3844_p12 }
  0x1e   :  { %p3847_p1 = pnand %p3846_p0, %p3840_p11 }
  0x20   :  { %3850 = shalt.err (!%p3847_p1)
}
  0x21   :  { %42 = dma.hbm_to_vmem [thread:$0]  %s5217_s2, 4096, %s37_s28, [#allocation5], %s3856_s23, %s3856_s23, %s3857_s24  }
  0x22   :  { %3851 = dma.done.wait [#allocation3], 4096  }
  0x23   :  { %3852 = vsyncadd [#allocation3], 4294963200 }
  0x24   :  { %3853 = dma.done.wait [#allocation5], 4096  }
  0x25   :  { %3854 = vsyncadd [#allocation5], 4294963200  ;;  %v3943_v0 = vld [vmem:[%s5218_s3 + $0x80] sm:$0xff]  ;;  %v3948_v1 = vld [vmem:[%s5218_s3 + $0x88] sm:$0xff]  ;;  %vm506_vm0 = vcmask 130048   ;;  %vm1272_vm1 = vcmask 261120  }
  0x26   :  { %v3953_v2 = vld [vmem:[%s5218_s3] sm:$0xff]  ;;  %v139_v3 = vpack.c.bf16 %v3948_v1, %v3943_v0  ;;  %v3960_v4 = vld [vmem:[%s5218_s3 + $0x8] sm:$0xff]  ;;  %v3965_v5 = vld [vmem:[%s5218_s3 + $0x90] sm:$0xff] }
  0x27   :  { %v3970_v6 = vld [vmem:[%s5218_s3 + $0x98] sm:$0xff]  ;;  %v131_v7 = vpack.c.bf16 %v3960_v4, %v3953_v2  ;;  %v3979_v9 = vld [vmem:[%s5218_s3 + $0x10] sm:$0xff]  ;;  %v3989_v11 = vld [vmem:[%s5218_s3 + $0xa0] sm:$0xff] }
  0x28   :  { %v140_v8 = vpack.c.bf16 %v3970_v6, %v3965_v5  ;;  %v3984_v10 = vld [vmem:[%s5218_s3 + $0x18] sm:$0xff]  ;;  %2949 = vmatprep.subr.bf16.mxu0 %v139_v3  ;;  %v3994_v12 = vld [vmem:[%s5218_s3 + $0xa8] sm:$0xff]  ;;  %v4003_v15 = vld [vmem:[%s5218_s3 + $0x20] sm:$0xff] }
  0x29   :  { %2950 = vmatpush3.bf16.msra.mxu0 %v131_v7  ;;  %v132_v13 = vpack.c.bf16 %v3984_v10, %v3979_v9  ;;  %v141_v14 = vpack.c.bf16 %v3994_v12, %v3989_v11  ;;  %v4008_v16 = vld [vmem:[%s5218_s3 + $0x28] sm:$0xff]  ;;  %v4013_v17 = vld [vmem:[%s5218_s3 + $0xb0] sm:$0xff]  ;;  %v4018_v18 = vld [vmem:[%s5218_s3 + $0xb8] sm:$0xff] }
  0x2a   :  { %2951 = vmatprep.subr.bf16.mxu0 %v140_v8  ;;  %v133_v19 = vpack.c.bf16 %v4008_v16, %v4003_v15  ;;  %v142_v20 = vpack.c.bf16 %v4018_v18, %v4013_v17  ;;  %v4027_v21 = vld [vmem:[%s5218_s3 + $0x30] sm:$0xff]  ;;  %v4032_v22 = vld [vmem:[%s5218_s3 + $0x38] sm:$0xff]  ;;  %v4037_v23 = vld [vmem:[%s5218_s3 + $0xc0] sm:$0xff] }
  0x2b   :  { %v4042_v24 = vld [vmem:[%s5218_s3 + $0xc8] sm:$0xff]  ;;  %v134_v26 = vpack.c.bf16 %v4032_v22, %v4027_v21  ;;  %v4052_v27 = vld [vmem:[%s5218_s3 + $0x40] sm:$0xff]  ;;  %v4064_v30 = vld [vmem:[%s5218_s3 + $0xd0] sm:$0xff] }
  0x2c   :  { %v3601_v25 = vld [vmem:[%s5215_s0 + $0x4] ss:$8 sps:$4 sm:$0xff]   ;;  %v143_v28 = vpack.c.bf16 %v4042_v24, %v4037_v23  ;;  %v4069_v31 = vld [vmem:[%s5218_s3 + $0xd8] sm:$0xff]  ;;  %v4076_v33 = vld [vmem:[%s5218_s3 + $0x50] sm:$0xff] }
  0x2d   :  { %2952 = vmatpush3.bf16.msra.mxu0 %v132_v13  ;;  %v4059_v29 = vld [vmem:[%s5218_s3 + $0x48] sm:$0xff]  ;;  %339 = vmatprep.mubr.bf16.mxu0 %v3601_v25  ;;  %v144_v34 = vpack.c.bf16 %v4069_v31, %v4064_v30  ;;  %v4083_v35 = vld [vmem:[%s5218_s3 + $0x58] sm:$0xff]  ;;  %v4088_v36 = vld [vmem:[%s5218_s3 + $0xe0] sm:$0xff] }
  0x2e   :  { %2953 = vmatprep.subr.bf16.mxu0 %v141_v14  ;;  %v135_v32 = vpack.c.bf16 %v4059_v29, %v4052_v27  ;;  %v4093_v37 = vld [vmem:[%s5218_s3 + $0xe8] sm:$0xff]  ;;  %v136_v38 = vpack.c.bf16 %v4083_v35, %v4076_v33  ;;  %v4100_v39 = vld [vmem:[%s5218_s3 + $0x60] sm:$0xff]  ;;  %v4112_v42 = vld [vmem:[%s5218_s3 + $0xf0] sm:$0xff] }
  0x2f   :  { %v145_v40 = vpack.c.bf16 %v4093_v37, %v4088_v36  ;;  %v4107_v41 = vld [vmem:[%s5218_s3 + $0x68] sm:$0xff]  ;;  %v4117_v43 = vld [vmem:[%s5218_s3 + $0xf8] sm:$0xff]  ;;  %v4124_v45 = vld [vmem:[%s5218_s3 + $0x70] sm:$0xff] }
  0x30   :  { %v137_v44 = vpack.c.bf16 %v4107_v41, %v4100_v39  ;;  %v146_v46 = vpack.c.bf16 %v4117_v43, %v4112_v42  ;;  %v4131_v47 = vld [vmem:[%s5218_s3 + $0x78] sm:$0xff]  ;;  %v3599_v49 = vld [vmem:[%s5215_s0] ss:$8 sps:$4 sm:$0xff]   ;;  %v3605_v52 = vld [vmem:[%s5215_s0 + $0x24] ss:$8 sps:$4 sm:$0xff]  }
  0x31   :  { %2954 = vmatpush3.bf16.msra.mxu0 %v133_v19  ;;  %v138_v48 = vpack.c.bf16 %v4131_v47, %v4124_v45  ;;  %v3602_v50 = vld [vmem:[%s5215_s0 + $0x14] ss:$8 sps:$4 sm:$0xff]   ;;  %v3604_v51 = vld [vmem:[%s5215_s0 + $0x10] ss:$8 sps:$4 sm:$0xff]   ;;  %v3607_v53 = vld [vmem:[%s5215_s0 + $0x20] ss:$8 sps:$4 sm:$0xff]  }
  0x32   :  { %2955 = vmatprep.subr.bf16.mxu0 %v142_v20  ;;  %v3608_v54 = vld [vmem:[%s5215_s0 + $0x34] ss:$8 sps:$4 sm:$0xff]   ;;  %v3610_v55 = vld [vmem:[%s5215_s0 + $0x30] ss:$8 sps:$4 sm:$0xff]   ;;  %v3611_v56 = vld [vmem:[%s5215_s0 + $0x44] ss:$8 sps:$4 sm:$0xff]  }
  0x33   :  { %v3613_v57 = vld [vmem:[%s5215_s0 + $0x40] ss:$8 sps:$4 sm:$0xff]   ;;  %v3614_v58 = vld [vmem:[%s5215_s0 + $0x54] ss:$8 sps:$4 sm:$0xff]   ;;  %v3616_v59 = vld [vmem:[%s5215_s0 + $0x50] ss:$8 sps:$4 sm:$0xff]  }
  0x34   :  { %v3617_v60 = vld [vmem:[%s5215_s0 + $0x64] ss:$8 sps:$4 sm:$0xff]   ;;  %v3619_v61 = vld [vmem:[%s5215_s0 + $0x60] ss:$8 sps:$4 sm:$0xff]   ;;  %v3620_v62 = vld [vmem:[%s5215_s0 + $0x74] ss:$8 sps:$4 sm:$0xff]  }
  0x35   :  { %2956 = vmatpush3.bf16.msra.mxu0 %v134_v26  ;;  %v3622_v63 = vld [vmem:[%s5215_s0 + $0x70] ss:$8 sps:$4 sm:$0xff]   ;;  %v3623_v3 = vld [vmem:[%s5215_s0 + $0x84] ss:$8 sps:$4 sm:$0xff]   ;;  %v3625_v7 = vld [vmem:[%s5215_s0 + $0x80] ss:$8 sps:$4 sm:$0xff]  }
  0x36   :  { %2957 = vmatprep.subr.bf16.mxu0 %v143_v28  ;;  %v3626_v8 = vld [vmem:[%s5215_s0 + $0x94] ss:$8 sps:$4 sm:$0xff]   ;;  %v3628_v13 = vld [vmem:[%s5215_s0 + $0x90] ss:$8 sps:$4 sm:$0xff]   ;;  %v3629_v14 = vld [vmem:[%s5215_s0 + $0xa4] ss:$8 sps:$4 sm:$0xff]  }
  0x37   :  { %v3631_v19 = vld [vmem:[%s5215_s0 + $0xa0] ss:$8 sps:$4 sm:$0xff]   ;;  %v3632_v20 = vld [vmem:[%s5215_s0 + $0xb4] ss:$8 sps:$4 sm:$0xff]   ;;  %v3634_v25 = vld [vmem:[%s5215_s0 + $0xb0] ss:$8 sps:$4 sm:$0xff]  }
  0x38   :  { %v128_v26 = vld [vmem:[%s5219_s4] sm:$0xff]  ;;  %v129_v28 = vld [vmem:[%s5219_s4 + $0x8] sm:$0xff] }
  0x39   :  { %2958 = vmatpush3.bf16.msra.mxu0 %v135_v32  ;;  %v3635_v32 = vld [vmem:[%s5215_s0 + $0xc4] ss:$8 sps:$4 sm:$0xff]  }
  0x3a   :  { %2959 = vmatprep.subr.bf16.mxu0 %v144_v34  ;;  %v3555_v34 = vpack.c.bf16 %v129_v28, %v128_v26 }
  0x3c   :  { %3556 = vmatprep.subr.bf16.mxu1 %v3555_v34 }
  0x3d   :  { %2960 = vmatpush3.bf16.msra.mxu0 %v136_v38  ;;  %3558 = vmatpush3.bf16.msra.mxu1 %v3555_v34  ;;  %v3637_v38 = vld [vmem:[%s5215_s0 + $0xc0] ss:$8 sps:$4 sm:$0xff]  }
  0x3e   :  { %2961 = vmatprep.subr.bf16.mxu0 %v145_v40  ;;  %v3638_v40 = vld [vmem:[%s5215_s0 + $0xd4] ss:$8 sps:$4 sm:$0xff]  }
  0x41   :  { %2962 = vmatpush3.bf16.msra.mxu0 %v137_v44  ;;  %v3640_v44 = vld [vmem:[%s5215_s0 + $0xd0] ss:$8 sps:$4 sm:$0xff]  }
  0x42   :  { %2963 = vmatprep.subr.bf16.mxu0 %v146_v46  ;;  %v3641_v46 = vld [vmem:[%s5215_s0 + $0xe4] ss:$8 sps:$4 sm:$0xff]  }
  0x45   :  { %2964 = vmatpush3.bf16.msra.mxu0 %v138_v48  ;;  %v3643_v48 = vld [vmem:[%s5215_s0 + $0xe0] ss:$8 sps:$4 sm:$0xff]  }
  0x48   :  { %340 = vmatmul.mubr.bf16.vlgmr.msra.gmra.mrb[0].mxu0 %v3599_v49  ;;  %v3644_v49 = vld [vmem:[%s5215_s0 + $0xf4] ss:$8 sps:$4 sm:$0xff]  }
  0x49   :  { %347 = vmatprep.mubr.bf16.mxu0 %v3602_v50  ;;  %v3646_v50 = vld [vmem:[%s5215_s0 + $0xf0] ss:$8 sps:$4 sm:$0xff]  }
  0x50   :  { %348 = vmatmul.mubr.bf16.gmra.mrb[4].mxu0 %v3604_v51 }
  0x51   :  { %355 = vmatprep.mubr.bf16.mxu0 %v3605_v52 }
  0x58   :  { %356 = vmatmul.mubr.bf16.gmra.mrb[8].mxu0 %v3607_v53 }
  0x59   :  { %363 = vmatprep.mubr.bf16.mxu0 %v3608_v54 }
  0x60   :  { %364 = vmatmul.mubr.bf16.gmra.mrb[12].mxu0 %v3610_v55 }
  0x61   :  { %371 = vmatprep.mubr.bf16.mxu0 %v3611_v56 }
  0x68   :  { %372 = vmatmul.mubr.bf16.gmra.mrb[16].mxu0 %v3613_v57 }
  0x69   :  { %379 = vmatprep.mubr.bf16.mxu0 %v3614_v58 }
  0x70   :  { %380 = vmatmul.mubr.bf16.gmra.mrb[20].mxu0 %v3616_v59 }
  0x71   :  { %387 = vmatprep.mubr.bf16.mxu0 %v3617_v60 }
  0x78   :  { %388 = vmatmul.mubr.bf16.gmra.mrb[24].mxu0 %v3619_v61 }
  0x79   :  { %395 = vmatprep.mubr.bf16.mxu0 %v3620_v62 }
  0x80   :  { %396 = vmatmul.mubr.bf16.gmra.mrb[28].mxu0 %v3622_v63 }
  0x81   :  { %403 = vmatprep.mubr.bf16.mxu0 %v3623_v3 }
  0x88   :  { %404 = vmatmul.mubr.bf16.gmra.mrb[32].mxu0 %v3625_v7 }
  0x89   :  { %411 = vmatprep.mubr.bf16.mxu0 %v3626_v8 }
  0x90   :  { %412 = vmatmul.mubr.bf16.gmra.mrb[36].mxu0 %v3628_v13 }
  0x91   :  { %419 = vmatprep.mubr.bf16.mxu0 %v3629_v14 }
  0x98   :  { %420 = vmatmul.mubr.bf16.gmra.mrb[40].mxu0 %v3631_v19 }
  0x99   :  { %427 = vmatprep.mubr.bf16.mxu0 %v3632_v20 }
  0xa0   :  { %428 = vmatmul.mubr.bf16.gmra.mrb[44].mxu0 %v3634_v25 }
  0xa1   :  { %435 = vmatprep.mubr.bf16.mxu0 %v3635_v32 }
  0xa8   :  { %436 = vmatmul.mubr.bf16.gmra.mrb[48].mxu0 %v3637_v38 }
  0xa9   :  { %443 = vmatprep.mubr.bf16.mxu0 %v3638_v40 }
  0xb0   :  { %444 = vmatmul.mubr.bf16.gmra.mrb[52].mxu0 %v3640_v44 }
  0xb1   :  { %451 = vmatprep.mubr.bf16.mxu0 %v3641_v46 }
  0xb8   :  { %452 = vmatmul.mubr.bf16.gmra.mrb[56].mxu0 %v3643_v48 }
  0xb9   :  { %459 = vmatprep.mubr.bf16.mxu0 %v3644_v49 }
  0xc0   :  { %460 = vmatmul.mubr.bf16.gmra.mrb[60].mxu0 %v3646_v50 }
 0x11b   :  { %v2965_v51 = vpop.f32.mrb[0].mxu0 }
 0x11c   :  { %v2966_v52 = vpop.f32.mrb[1].mxu0 }
 0x11d   :  { %v2967_v53 = vadd.f32 %v2966_v52, %v2965_v51  ;;  %v2968_v54 = vpop.f32.mrb[2].mxu0 }
 0x11e   :  { %v2969_v55 = vpop.f32.mrb[3].mxu0 }
 0x11f   :  { %v2970_v56 = vadd.f32 %v2969_v55, %v2968_v54  ;;  %v468_v57 = vadd.f32 %v2967_v53, %v3953_v2 }
 0x121   :  { %v469_v58 = vadd.f32 %v2970_v56, %v3960_v4  ;;  %3395 = vmatprep.mubr.msk.f32.mxu1 %vm506_vm0, %v468_v57 }
 0x123   :  { %v2971_v59 = vpop.f32.mrb[4].mxu0  ;;  %3396 = vmatmul.mubr.msk.f32.vlgmr.msra.gmra.mrb[0].mxu1 %vm506_vm0, %v469_v58 }
 0x124   :  { %v2972_v60 = vpop.f32.mrb[5].mxu0 }
 0x125   :  { %v2973_v61 = vadd.f32 %v2972_v60, %v2971_v59  ;;  %v2974_v62 = vpop.f32.mrb[6].mxu0 }
 0x126   :  { %v2975_v63 = vpop.f32.mrb[7].mxu0 }
 0x127   :  { %v470_v3 = vadd.f32 %v2973_v61, %v3979_v9  ;;  %v2976_v7 = vadd.f32 %v2975_v63, %v2974_v62 }
 0x129   :  { %v471_v8 = vadd.f32 %v2976_v7, %v3984_v10  ;;  %3398 = vmatprep.mubr.msk.f32.mxu1 %vm506_vm0, %v470_v3 }
 0x12b   :  { %v2977_v13 = vpop.f32.mrb[8].mxu0  ;;  %3399 = vmatmul.mubr.msk.f32.gmra.mrb[2].mxu1 %vm506_vm0, %v471_v8 }
 0x12c   :  { %v2978_v2 = vpop.f32.mrb[9].mxu0 }
 0x12d   :  { %v2979_v4 = vadd.f32 %v2978_v2, %v2977_v13  ;;  %v2980_v14 = vpop.f32.mrb[10].mxu0 }
 0x12e   :  { %v2981_v19 = vpop.f32.mrb[11].mxu0 }
 0x12f   :  { %v472_v20 = vadd.f32 %v2979_v4, %v4003_v15  ;;  %v2982_v25 = vadd.f32 %v2981_v19, %v2980_v14 }
 0x131   :  { %v473_v26 = vadd.f32 %v2982_v25, %v4008_v16  ;;  %3401 = vmatprep.mubr.msk.f32.mxu1 %vm506_vm0, %v472_v20 }
 0x133   :  { %v2983_v9 = vpop.f32.mrb[12].mxu0  ;;  %3402 = vmatmul.mubr.msk.f32.gmra.mrb[4].mxu1 %vm506_vm0, %v473_v26 }
 0x134   :  { %v2984_v10 = vpop.f32.mrb[13].mxu0 }
 0x135   :  { %v2985_v28 = vadd.f32 %v2984_v10, %v2983_v9  ;;  %v2986_v32 = vpop.f32.mrb[14].mxu0 }
 0x136   :  { %v2987_v34 = vpop.f32.mrb[15].mxu0 }
 0x137   :  { %v474_v38 = vadd.f32 %v2985_v28, %v4027_v21  ;;  %v2988_v40 = vadd.f32 %v2987_v34, %v2986_v32 }
 0x139   :  { %v475_v44 = vadd.f32 %v2988_v40, %v4032_v22  ;;  %3404 = vmatprep.mubr.msk.f32.mxu1 %vm506_vm0, %v474_v38 }
 0x13b   :  { %v2989_v15 = vpop.f32.mrb[16].mxu0  ;;  %3405 = vmatmul.mubr.msk.f32.gmra.mrb[6].mxu1 %vm506_vm0, %v475_v44 }
 0x13c   :  { %v2990_v16 = vpop.f32.mrb[17].mxu0 }
 0x13d   :  { %v2991_v46 = vadd.f32 %v2990_v16, %v2989_v15  ;;  %v2992_v48 = vpop.f32.mrb[18].mxu0 }
 0x13e   :  { %v2993_v49 = vpop.f32.mrb[19].mxu0 }
 0x13f   :  { %v476_v50 = vadd.f32 %v2991_v46, %v4052_v27  ;;  %v2994_v51 = vadd.f32 %v2993_v49, %v2992_v48 }
 0x141   :  { %v477_v52 = vadd.f32 %v2994_v51, %v4059_v29  ;;  %3407 = vmatprep.mubr.msk.f32.mxu1 %vm506_vm0, %v476_v50 }
 0x143   :  { %v2995_v21 = vpop.f32.mrb[20].mxu0  ;;  %3408 = vmatmul.mubr.msk.f32.gmra.mrb[8].mxu1 %vm506_vm0, %v477_v52 }
 0x144   :  { %v2996_v22 = vpop.f32.mrb[21].mxu0 }
 0x145   :  { %v2997_v53 = vadd.f32 %v2996_v22, %v2995_v21  ;;  %v2998_v54 = vpop.f32.mrb[22].mxu0 }
 0x146   :  { %v2999_v55 = vpop.f32.mrb[23].mxu0 }
 0x147   :  { %v478_v56 = vadd.f32 %v2997_v53, %v4076_v33  ;;  %v3000_v57 = vadd.f32 %v2999_v55, %v2998_v54 }
 0x149   :  { %v479_v58 = vadd.f32 %v3000_v57, %v4083_v35  ;;  %3410 = vmatprep.mubr.msk.f32.mxu1 %vm506_vm0, %v478_v56 }
 0x14b   :  { %v3001_v27 = vpop.f32.mrb[24].mxu0  ;;  %3411 = vmatmul.mubr.msk.f32.gmra.mrb[10].mxu1 %vm506_vm0, %v479_v58 }
 0x14c   :  { %v3002_v29 = vpop.f32.mrb[25].mxu0 }
 0x14d   :  { %v3003_v59 = vadd.f32 %v3002_v29, %v3001_v27  ;;  %v3004_v60 = vpop.f32.mrb[26].mxu0 }
 0x14e   :  { %v3005_v61 = vpop.f32.mrb[27].mxu0 }
 0x14f   :  { %v480_v62 = vadd.f32 %v3003_v59, %v4100_v39  ;;  %v3006_v63 = vadd.f32 %v3005_v61, %v3004_v60 }
 0x151   :  { %v481_v3 = vadd.f32 %v3006_v63, %v4107_v41  ;;  %3413 = vmatprep.mubr.msk.f32.mxu1 %vm506_vm0, %v480_v62 }
 0x153   :  { %v3007_v33 = vpop.f32.mrb[28].mxu0  ;;  %3414 = vmatmul.mubr.msk.f32.gmra.mrb[12].mxu1 %vm506_vm0, %v481_v3 }
 0x154   :  { %v3008_v35 = vpop.f32.mrb[29].mxu0 }
 0x155   :  { %v3009_v7 = vadd.f32 %v3008_v35, %v3007_v33  ;;  %v3010_v8 = vpop.f32.mrb[30].mxu0 }
 0x156   :  { %v3011_v13 = vpop.f32.mrb[31].mxu0 }
 0x157   :  { %v482_v2 = vadd.f32 %v3009_v7, %v4124_v45  ;;  %v3012_v4 = vadd.f32 %v3011_v13, %v3010_v8 }
 0x159   :  { %v483_v14 = vadd.f32 %v3012_v4, %v4131_v47  ;;  %3416 = vmatprep.mubr.msk.f32.mxu1 %vm506_vm0, %v482_v2 }
 0x15b   :  { %v3013_v39 = vpop.f32.mrb[32].mxu0  ;;  %3417 = vmatmul.mubr.msk.f32.gmra.mrb[14].mxu1 %vm506_vm0, %v483_v14 }
 0x15c   :  { %v3014_v41 = vpop.f32.mrb[33].mxu0 }
 0x15d   :  { %v3015_v19 = vadd.f32 %v3014_v41, %v3013_v39  ;;  %v3016_v20 = vpop.f32.mrb[34].mxu0 }
 0x15e   :  { %v3017_v25 = vpop.f32.mrb[35].mxu0 }
 0x15f   :  { %v484_v26 = vadd.f32 %v3015_v19, %v3943_v0  ;;  %v3018_v9 = vadd.f32 %v3017_v25, %v3016_v20  ;;  %v3649_v25 = vld [vmem:[#allocation2 + $0x4] ss:$8 sps:$4 sm:$0xff]  }
 0x161   :  { %v485_v10 = vadd.f32 %v3018_v9, %v3948_v1  ;;  %3419 = vmatprep.mubr.msk.f32.mxu1 %vm506_vm0, %v484_v26 }
 0x163   :  { %v3019_v45 = vpop.f32.mrb[36].mxu0  ;;  %3420 = vmatmul.mubr.msk.f32.gmra.mrb[16].mxu1 %vm506_vm0, %v485_v10 }
 0x164   :  { %v3020_v47 = vpop.f32.mrb[37].mxu0 }
 0x165   :  { %v3021_v28 = vadd.f32 %v3020_v47, %v3019_v45  ;;  %v3022_v32 = vpop.f32.mrb[38].mxu0 }
 0x166   :  { %v3023_v34 = vpop.f32.mrb[39].mxu0 }
 0x167   :  { %v486_v38 = vadd.f32 %v3021_v28, %v3965_v5  ;;  %v3024_v40 = vadd.f32 %v3023_v34, %v3022_v32 }
 0x169   :  { %v487_v44 = vadd.f32 %v3024_v40, %v3970_v6  ;;  %3422 = vmatprep.mubr.msk.f32.mxu1 %vm506_vm0, %v486_v38 }
 0x16b   :  { %v3025_v0 = vpop.f32.mrb[40].mxu0  ;;  %3423 = vmatmul.mubr.msk.f32.gmra.mrb[18].mxu1 %vm506_vm0, %v487_v44 }
 0x16c   :  { %v3026_v1 = vpop.f32.mrb[41].mxu0 }
 0x16d   :  { %v3027_v15 = vadd.f32 %v3026_v1, %v3025_v0  ;;  %v3028_v16 = vpop.f32.mrb[42].mxu0  ;;  %v4317_v1 = vld [vmem:[%s5220_s5] ss:$0 sm:$0xff] }
 0x16e   :  { %v3029_v46 = vpop.f32.mrb[43].mxu0 }
 0x16f   :  { %v488_v48 = vadd.f32 %v3027_v15, %v3989_v11  ;;  %v3030_v49 = vadd.f32 %v3029_v46, %v3028_v16 }
 0x171   :  { %v489_v50 = vadd.f32 %v3030_v49, %v3994_v12  ;;  %3425 = vmatprep.mubr.msk.f32.mxu1 %vm506_vm0, %v488_v48 }
 0x173   :  { %v3031_v5 = vpop.f32.mrb[44].mxu0  ;;  %3426 = vmatmul.mubr.msk.f32.gmra.mrb[20].mxu1 %vm506_vm0, %v489_v50 }
 0x174   :  { %v3032_v6 = vpop.f32.mrb[45].mxu0 }
 0x175   :  { %v3033_v51 = vadd.f32 %v3032_v6, %v3031_v5  ;;  %v3034_v52 = vpop.f32.mrb[46].mxu0 }
 0x176   :  { %v3035_v21 = vpop.f32.mrb[47].mxu0 }
 0x177   :  { %v490_v22 = vadd.f32 %v3033_v51, %v4013_v17  ;;  %v3036_v53 = vadd.f32 %v3035_v21, %v3034_v52 }
 0x179   :  { %v491_v54 = vadd.f32 %v3036_v53, %v4018_v18  ;;  %3428 = vmatprep.mubr.msk.f32.mxu1 %vm506_vm0, %v490_v22 }
 0x17b   :  { %v3037_v11 = vpop.f32.mrb[48].mxu0  ;;  %3429 = vmatmul.mubr.msk.f32.gmra.mrb[22].mxu1 %vm506_vm0, %v491_v54 }
 0x17c   :  { %v3038_v12 = vpop.f32.mrb[49].mxu0 }
 0x17d   :  { %v3039_v55 = vadd.f32 %v3038_v12, %v3037_v11  ;;  %v3040_v56 = vpop.f32.mrb[50].mxu0 }
 0x17e   :  { %v3041_v57 = vpop.f32.mrb[51].mxu0 }
 0x17f   :  { %v492_v58 = vadd.f32 %v3039_v55, %v4037_v23  ;;  %v3042_v27 = vadd.f32 %v3041_v57, %v3040_v56 }
 0x181   :  { %v493_v29 = vadd.f32 %v3042_v27, %v4042_v24  ;;  %3431 = vmatprep.mubr.msk.f32.mxu1 %vm506_vm0, %v492_v58 }
 0x183   :  { %v3043_v17 = vpop.f32.mrb[52].mxu0  ;;  %3432 = vmatmul.mubr.msk.f32.gmra.mrb[24].mxu1 %vm506_vm0, %v493_v29 }
 0x184   :  { %v3044_v18 = vpop.f32.mrb[53].mxu0 }
 0x185   :  { %v3045_v59 = vadd.f32 %v3044_v18, %v3043_v17  ;;  %v3046_v60 = vpop.f32.mrb[54].mxu0 }
 0x186   :  { %v3047_v61 = vpop.f32.mrb[55].mxu0 }
 0x187   :  { %v494_v62 = vadd.f32 %v3045_v59, %v4064_v30  ;;  %v3048_v63 = vadd.f32 %v3047_v61, %v3046_v60 }
 0x189   :  { %v495_v3 = vadd.f32 %v3048_v63, %v4069_v31  ;;  %3434 = vmatprep.mubr.msk.f32.mxu1 %vm506_vm0, %v494_v62 }
 0x18b   :  { %v3049_v23 = vpop.f32.mrb[56].mxu0  ;;  %3435 = vmatmul.mubr.msk.f32.gmra.mrb[26].mxu1 %vm506_vm0, %v495_v3 }
 0x18c   :  { %v3050_v24 = vpop.f32.mrb[57].mxu0 }
 0x18d   :  { %v3051_v33 = vadd.f32 %v3050_v24, %v3049_v23  ;;  %v3052_v35 = vpop.f32.mrb[58].mxu0 }
 0x18e   :  { %v3053_v7 = vpop.f32.mrb[59].mxu0 }
 0x18f   :  { %v496_v8 = vadd.f32 %v3051_v33, %v4088_v36  ;;  %v3054_v13 = vadd.f32 %v3053_v7, %v3052_v35 }
 0x191   :  { %v497_v2 = vadd.f32 %v3054_v13, %v4093_v37  ;;  %3437 = vmatprep.mubr.msk.f32.mxu1 %vm506_vm0, %v496_v8 }
 0x193   :  { %v3055_v30 = vpop.f32.mrb[60].mxu0  ;;  %3438 = vmatmul.mubr.msk.f32.gmra.mrb[28].mxu1 %vm506_vm0, %v497_v2 }
 0x194   :  { %v3056_v31 = vpop.f32.mrb[61].mxu0 }
 0x195   :  { %v3057_v4 = vadd.f32 %v3056_v31, %v3055_v30  ;;  %v3058_v14 = vpop.f32.mrb[62].mxu0 }
 0x196   :  { %v3059_v39 = vpop.f32.mrb[63].mxu0 }
 0x197   :  { %v498_v41 = vadd.f32 %v3057_v4, %v4112_v42  ;;  %v3060_v19 = vadd.f32 %v3059_v39, %v3058_v14 }
 0x199   :  { %v499_v20 = vadd.f32 %v3060_v19, %v4117_v43  ;;  %3440 = vmatprep.mubr.msk.f32.mxu1 %vm506_vm0, %v498_v41 }
 0x19b   :  { %3441 = vmatmul.mubr.msk.f32.gmra.mrb[30].mxu1 %vm506_vm0, %v499_v20 }
 0x19c   :  { %1105 = vmatprep.mubr.bf16.mxu1 %v3649_v25 }
 0x1f6   :  { %v3397_v36 = vpop.f32.mrb[0].mxu1 }
 0x1f7   :  { %v669_v37 = vpop.f32.mrb[1].mxu1  ;;  %v4320_v15 = vadd.f32 %v3397_v36, %v4317_v1 }
 0x1f8   :  { %v4323_v16 = vadd.f32 %v4317_v1, %v669_v37 }
 0x1f9   :  { %v829_v5 = vmax.f32 %v4320_v15, 0.0 }
 0x1fa   :  { %v828_v6 = vmax.f32 %v4323_v16, 0.0 }
 0x1fc   :  { %v897_v22 = vpack.c.bf16 %v829_v5, %v828_v6 }
 0x1fe   :  { %v3400_v26 = vpop.f32.mrb[2].mxu1 }
 0x1ff   :  { %v679_v9 = vpop.f32.mrb[3].mxu1  ;;  %v4344_v53 = vadd.f32 %v3400_v26, %v4317_v1 }
 0x200   :  { %v4347_v54 = vadd.f32 %v4317_v1, %v679_v9 }
 0x201   :  { %v831_v57 = vmax.f32 %v4344_v53, 0.0 }
 0x202   :  { %v830_v58 = vmax.f32 %v4347_v54, 0.0 }
 0x204   :  { %v898_v18 = vpack.c.bf16 %v831_v57, %v830_v58 }
 0x206   :  { %v3403_v10 = vpop.f32.mrb[4].mxu1 }
 0x207   :  { %v689_v45 = vpop.f32.mrb[5].mxu1  ;;  %v4368_v59 = vadd.f32 %v3403_v10, %v4317_v1 }
 0x208   :  { %v4371_v60 = vadd.f32 %v4317_v1, %v689_v45 }
 0x209   :  { %v833_v23 = vmax.f32 %v4368_v59, 0.0 }
 0x20a   :  { %v832_v24 = vmax.f32 %v4371_v60, 0.0 }
 0x20c   :  { %v899_v8 = vpack.c.bf16 %v833_v23, %v832_v24 }
 0x20e   :  { %v3406_v47 = vpop.f32.mrb[6].mxu1 }
 0x20f   :  { %v699_v28 = vpop.f32.mrb[7].mxu1  ;;  %v4392_v13 = vadd.f32 %v3406_v47, %v4317_v1 }
 0x210   :  { %v4395_v2 = vadd.f32 %v4317_v1, %v699_v28 }
 0x211   :  { %v835_v39 = vmax.f32 %v4392_v13, 0.0 }
 0x212   :  { %v834_v41 = vmax.f32 %v4395_v2, 0.0 }
 0x214   :  { %v900_v37 = vpack.c.bf16 %v835_v39, %v834_v41 }
 0x216   :  { %v4298_v32 = vpop.f32.mrb[8].mxu1 }
 0x217   :  { %v4300_v42 = vpop.f32.mrb[9].mxu1  ;;  %v4417_v25 = vadd.f32 %v4298_v32, %v4317_v1 }
 0x218   :  { %v4421_v26 = vadd.f32 %v4317_v1, %v4300_v42 }
 0x219   :  { %v837_v28 = vmax.f32 %v4417_v25, 0.0 }
 0x21e   :  { %v4302_v34 = vpop.f32.mrb[10].mxu1 }
 0x21f   :  { %v4304_v43 = vpop.f32.mrb[11].mxu1 }
 0x226   :  { %v4306_v38 = vpop.f32.mrb[12].mxu1 }
 0x227   :  { %v4308_v40 = vpop.f32.mrb[13].mxu1 }
 0x22e   :  { %v4310_v44 = vpop.f32.mrb[14].mxu1 }
 0x22f   :  { %v4312_v0 = vpop.f32.mrb[15].mxu1 }
 0x236   :  { %v3421_v46 = vpop.f32.mrb[16].mxu1 }
 0x237   :  { %v4326_v48 = vadd.f32 %v3421_v46, %v4317_v1  ;;  %v749_v49 = vpop.f32.mrb[17].mxu1  ;;  %v836_v46 = vmax.f32 %v4421_v26, 0.0 }
 0x238   :  { %v4329_v50 = vadd.f32 %v4317_v1, %v749_v49 }
 0x239   :  { %v845_v51 = vmax.f32 %v4326_v48, 0.0 }
 0x23a   :  { %v844_v52 = vmax.f32 %v4329_v50, 0.0 }
 0x23c   :  { %v905_v21 = vpack.c.bf16 %v845_v51, %v844_v52 }
 0x23e   :  { %v3424_v11 = vpop.f32.mrb[18].mxu1  ;;  %3095 = vmatprep.subr.bf16.mxu1 %v905_v21  ;;  %v901_v21 = vpack.c.bf16 %v837_v28, %v836_v46 }
 0x23f   :  { %v4350_v12 = vadd.f32 %v3424_v11, %v4317_v1  ;;  %v759_v55 = vpop.f32.mrb[19].mxu1  ;;  %3096 = vmatpush3.bf16.msra.mxu1 %v897_v22  ;;  %v4443_v22 = vadd.f32 %v4302_v34, %v4317_v1  ;;  %v4447_v11 = vadd.f32 %v4317_v1, %v4304_v43 }
 0x240   :  { %v4353_v56 = vadd.f32 %v4317_v1, %v759_v55 }
 0x241   :  { %v5238_v27 = vmax.f32 %v4350_v12, 0.0  ;;  %v5252_v50 = vmax.f32 %v4350_v12, 0.0 }
 0x242   :  { %v5239_v29 = vmax.f32 %v4353_v56, 0.0 }
 0x244   :  { %v906_v17 = vpack.c.bf16 %v5238_v27, %v5239_v29 }
 0x246   :  { %v3427_v61 = vpop.f32.mrb[20].mxu1  ;;  %3097 = vmatprep.subr.bf16.mxu1 %v906_v17 }
 0x247   :  { %v4374_v62 = vadd.f32 %v3427_v61, %v4317_v1  ;;  %v769_v63 = vpop.f32.mrb[21].mxu1  ;;  %3098 = vmatpush3.bf16.msra.mxu1 %v898_v18 }
 0x248   :  { %v4377_v3 = vadd.f32 %v4317_v1, %v769_v63  ;;  %v839_v63 = vmax.f32 %v4443_v22, 0.0 }
 0x249   :  { %v5234_v33 = vmax.f32 %v4374_v62, 0.0 }
 0x24a   :  { %v5237_v35 = vmax.f32 %v4377_v3, 0.0 }
 0x24c   :  { %v907_v7 = vpack.c.bf16 %v5234_v33, %v5237_v35  ;;  %v3656_v33 = vld [vmem:[#allocation2 + $0x34] ss:$8 sps:$4 sm:$0xff]   ;;  %v3661_v35 = vld [vmem:[#allocation2 + $0x40] ss:$8 sps:$4 sm:$0xff]  }
 0x24e   :  { %v3430_v30 = vpop.f32.mrb[22].mxu1  ;;  %3099 = vmatprep.subr.bf16.mxu1 %v907_v7  ;;  %v838_v7 = vmax.f32 %v4447_v11, 0.0 }
 0x24f   :  { %v4398_v31 = vadd.f32 %v3430_v30, %v4317_v1  ;;  %v779_v4 = vpop.f32.mrb[23].mxu1  ;;  %3100 = vmatpush3.bf16.msra.mxu1 %v899_v8 }
 0x250   :  { %v4401_v14 = vadd.f32 %v4317_v1, %v779_v4  ;;  %v902_v30 = vpack.c.bf16 %v839_v63, %v838_v7  ;;  %v4469_v4 = vadd.f32 %v4306_v38, %v4317_v1 }
 0x251   :  { %v5232_v19 = vmax.f32 %v4398_v31, 0.0 }
 0x252   :  { %v5233_v20 = vmax.f32 %v4401_v14, 0.0 }
 0x254   :  { %v908_v36 = vpack.c.bf16 %v5232_v19, %v5233_v20  ;;  %v3650_v19 = vld [vmem:[#allocation2 + $0x14] ss:$8 sps:$4 sm:$0xff]   ;;  %v3652_v20 = vld [vmem:[#allocation2 + $0x10] ss:$8 sps:$4 sm:$0xff]  }
 0x256   :  { %v3433_v9 = vpop.f32.mrb[24].mxu1  ;;  %3101 = vmatprep.subr.bf16.mxu1 %v908_v36  ;;  %v4473_v36 = vadd.f32 %v4317_v1, %v4308_v40 }
 0x257   :  { %v4424_v10 = vadd.f32 %v3433_v9, %v4317_v1  ;;  %v789_v45 = vpop.f32.mrb[25].mxu1  ;;  %3102 = vmatpush3.bf16.msra.mxu1 %v900_v37 }
 0x258   :  { %v4427_v47 = vadd.f32 %v4317_v1, %v789_v45 }
 0x259   :  { %v5230_v32 = vmax.f32 %v4424_v10, 0.0 }
 0x25a   :  { %v5231_v49 = vmax.f32 %v4427_v47, 0.0 }
 0x25c   :  { %v909_v42 = vpack.c.bf16 %v5230_v32, %v5231_v49 }
 0x25e   :  { %v3436_v55 = vpop.f32.mrb[26].mxu1  ;;  %3103 = vmatprep.subr.bf16.mxu1 %v909_v42 }
 0x25f   :  { %v4450_v17 = vadd.f32 %v3436_v55, %v4317_v1  ;;  %v799_v18 = vpop.f32.mrb[27].mxu1  ;;  %3104 = vmatpush3.bf16.msra.mxu1 %v901_v21  ;;  %v841_v21 = vmax.f32 %v4469_v4, 0.0  ;;  %v840_v55 = vmax.f32 %v4473_v36, 0.0 }
 0x260   :  { %v4453_v61 = vadd.f32 %v4317_v1, %v799_v18 }
 0x261   :  { %v5226_v34 = vmax.f32 %v4450_v17, 0.0 }
 0x262   :  { %v5227_v8 = vmax.f32 %v4453_v61, 0.0 }
 0x264   :  { %v910_v43 = vpack.c.bf16 %v5226_v34, %v5227_v8 }
 0x266   :  { %v3439_v37 = vpop.f32.mrb[28].mxu1  ;;  %3105 = vmatprep.subr.bf16.mxu1 %v910_v43  ;;  %v903_v43 = vpack.c.bf16 %v841_v21, %v840_v55 }
 0x267   :  { %v4476_v9 = vadd.f32 %v3439_v37, %v4317_v1  ;;  %v809_v45 = vpop.f32.mrb[29].mxu1  ;;  %3106 = vmatpush3.bf16.msra.mxu1 %v902_v30  ;;  %v4495_v30 = vadd.f32 %v4310_v44, %v4317_v1  ;;  %v4499_v37 = vadd.f32 %v4317_v1, %v4312_v0  ;;  %v892_v0 = vld [vmem:[%s5221_s6] sm:$0xff] }
 0x268   :  { %v4479_v42 = vadd.f32 %v4317_v1, %v809_v45 }
 0x269   :  { %v5228_v38 = vmax.f32 %v4476_v9, 0.0  ;;  %v842_v32 = vmax.f32 %v4499_v37, 0.0 }
 0x26a   :  { %v5229_v18 = vmax.f32 %v4479_v42, 0.0 }
 0x26c   :  { %v911_v40 = vpack.c.bf16 %v5228_v38, %v5229_v18  ;;  %v843_v18 = vmax.f32 %v4495_v30, 0.0 }
 0x26e   :  { %v3442_v45 = vpop.f32.mrb[30].mxu1  ;;  %3107 = vmatprep.subr.bf16.mxu1 %v911_v40  ;;  %v893_v40 = vld [vmem:[%s5221_s6 + $0x8] sm:$0xff] }
 0x26f   :  { %v4502_v34 = vadd.f32 %v3442_v45, %v4317_v1  ;;  %v819_v8 = vpop.f32.mrb[31].mxu1  ;;  %3108 = vmatpush3.bf16.msra.mxu1 %v903_v43  ;;  %v3559_v43 = vpack.c.bf16 %v893_v40, %v892_v0  ;;  %v3647_v45 = vld [vmem:[#allocation2] ss:$8 sps:$4 sm:$0xff]   ;;  %v3653_v0 = vld [vmem:[#allocation2 + $0x24] ss:$8 sps:$4 sm:$0xff]  }
 0x270   :  { %v4505_v38 = vadd.f32 %v4317_v1, %v819_v8  ;;  %v904_v8 = vpack.c.bf16 %v843_v18, %v842_v32  ;;  %v3655_v40 = vld [vmem:[#allocation2 + $0x20] ss:$8 sps:$4 sm:$0xff]  }
 0x271   :  { %v5235_v44 = vmax.f32 %v4502_v34, 0.0  ;;  %3560 = vmatprep.subr.bf16.mxu0 %v3559_v43 }
 0x272   :  { %v5236_v49 = vmax.f32 %v4505_v38, 0.0  ;;  %3562 = vmatpush3.bf16.msra.mxu0 %v3559_v43  ;;  %v3664_v43 = vld [vmem:[#allocation2 + $0x50] ss:$8 sps:$4 sm:$0xff]  }
 0x274   :  { %v912_v1 = vpack.c.bf16 %v5235_v44, %v5236_v49  ;;  %v3658_v44 = vld [vmem:[#allocation2 + $0x30] ss:$8 sps:$4 sm:$0xff]   ;;  %v3659_v49 = vld [vmem:[#allocation2 + $0x44] ss:$8 sps:$4 sm:$0xff]  }
 0x276   :  { %3109 = vmatprep.subr.bf16.mxu1 %v912_v1  ;;  %v3662_v1 = vld [vmem:[#allocation2 + $0x54] ss:$8 sps:$4 sm:$0xff]  }
 0x277   :  { %3110 = vmatpush3.bf16.msra.mxu1 %v904_v8  ;;  %v3665_v8 = vld [vmem:[#allocation2 + $0x64] ss:$8 sps:$4 sm:$0xff]  }
 0x27a   :  { %1106 = vmatmul.mubr.bf16.vlgmr.msra.gmra.mrb[32].mxu1 %v3647_v45  ;;  %v3668_v45 = vld [vmem:[#allocation2 + $0x74] ss:$8 sps:$4 sm:$0xff]  }
 0x27b   :  { %1113 = vmatprep.mubr.bf16.mxu1 %v3650_v19  ;;  %v3667_v19 = vld [vmem:[#allocation2 + $0x60] ss:$8 sps:$4 sm:$0xff]  }
 0x282   :  { %1114 = vmatmul.mubr.bf16.gmra.mrb[36].mxu1 %v3652_v20  ;;  %v3670_v20 = vld [vmem:[#allocation2 + $0x70] ss:$8 sps:$4 sm:$0xff]  }
 0x283   :  { %1121 = vmatprep.mubr.bf16.mxu1 %v3653_v0  ;;  %v3671_v0 = vld [vmem:[#allocation2 + $0x84] ss:$8 sps:$4 sm:$0xff]  }
 0x28a   :  { %1122 = vmatmul.mubr.bf16.gmra.mrb[40].mxu1 %v3655_v40  ;;  %v3674_v40 = vld [vmem:[#allocation2 + $0x94] ss:$8 sps:$4 sm:$0xff]  }
 0x28b   :  { %1129 = vmatprep.mubr.bf16.mxu1 %v3656_v33  ;;  %v3673_v33 = vld [vmem:[#allocation2 + $0x80] ss:$8 sps:$4 sm:$0xff]  }
 0x292   :  { %1130 = vmatmul.mubr.bf16.gmra.mrb[44].mxu1 %v3658_v44  ;;  %v3677_v44 = vld [vmem:[#allocation2 + $0xa4] ss:$8 sps:$4 sm:$0xff]  }
 0x293   :  { %1137 = vmatprep.mubr.bf16.mxu1 %v3659_v49  ;;  %v3676_v49 = vld [vmem:[#allocation2 + $0x90] ss:$8 sps:$4 sm:$0xff]  }
 0x29a   :  { %1138 = vmatmul.mubr.bf16.gmra.mrb[48].mxu1 %v3661_v35  ;;  %v3679_v35 = vld [vmem:[#allocation2 + $0xa0] ss:$8 sps:$4 sm:$0xff]  }
 0x29b   :  { %1145 = vmatprep.mubr.bf16.mxu1 %v3662_v1  ;;  %v3680_v1 = vld [vmem:[#allocation2 + $0xb4] ss:$8 sps:$4 sm:$0xff]  }
 0x2a2   :  { %1146 = vmatmul.mubr.bf16.gmra.mrb[52].mxu1 %v3664_v43  ;;  %v3682_v43 = vld [vmem:[#allocation2 + $0xb0] ss:$8 sps:$4 sm:$0xff]  }
 0x2a3   :  { %1153 = vmatprep.mubr.bf16.mxu1 %v3665_v8  ;;  %v894_v8 = vld [vmem:[%s5221_s6 + $0x10] sm:$0xff] }
 0x2aa   :  { %1154 = vmatmul.mubr.bf16.gmra.mrb[56].mxu1 %v3667_v19  ;;  %v895_v19 = vld [vmem:[%s5221_s6 + $0x18] sm:$0xff] }
 0x2ab   :  { %1161 = vmatprep.mubr.bf16.mxu1 %v3668_v45  ;;  %v3683_v45 = vld [vmem:[#allocation2 + $0xc4] ss:$8 sps:$4 sm:$0xff]  }
 0x2b2   :  { %1162 = vmatmul.mubr.bf16.gmra.mrb[60].mxu1 %v3670_v20  ;;  %v3563_v20 = vpack.c.bf16 %v895_v19, %v894_v8  ;;  %v1659_v8 = vld [vmem:[%s5223_s8 + $0x8] sm:$0xff] }
 0x2b3   :  { %1169 = vmatprep.mubr.bf16.mxu1 %v3671_v0  ;;  %v3685_v0 = vld [vmem:[#allocation2 + $0xc0] ss:$8 sps:$4 sm:$0xff]  }
 0x2b4   :  { %3564 = vmatprep.subr.bf16.mxu0 %v3563_v20 }
 0x2b5   :  { %3566 = vmatpush3.bf16.msra.mxu0 %v3563_v20 }
 0x2ba   :  { %1170 = vmatmul.mubr.bf16.gmra.mrb[64].mxu1 %v3673_v33  ;;  %v3686_v33 = vld [vmem:[#allocation2 + $0xd4] ss:$8 sps:$4 sm:$0xff]  }
 0x2bb   :  { %1177 = vmatprep.mubr.bf16.mxu1 %v3674_v40  ;;  %v3688_v40 = vld [vmem:[#allocation2 + $0xd0] ss:$8 sps:$4 sm:$0xff]  }
 0x2c2   :  { %1178 = vmatmul.mubr.bf16.gmra.mrb[68].mxu1 %v3676_v49  ;;  %v3689_v49 = vld [vmem:[#allocation2 + $0xe4] ss:$8 sps:$4 sm:$0xff]  }
 0x2c3   :  { %1185 = vmatprep.mubr.bf16.mxu1 %v3677_v44  ;;  %v3691_v44 = vld [vmem:[#allocation2 + $0xe0] ss:$8 sps:$4 sm:$0xff]  }
 0x2ca   :  { %1186 = vmatmul.mubr.bf16.gmra.mrb[72].mxu1 %v3679_v35  ;;  %v3692_v35 = vld [vmem:[#allocation2 + $0xf4] ss:$8 sps:$4 sm:$0xff]  }
 0x2cb   :  { %1193 = vmatprep.mubr.bf16.mxu1 %v3680_v1  ;;  %v3694_v1 = vld [vmem:[#allocation2 + $0xf0] ss:$8 sps:$4 sm:$0xff]  }
 0x2d2   :  { %1194 = vmatmul.mubr.bf16.gmra.mrb[76].mxu1 %v3682_v43  ;;  %v1658_v43 = vld [vmem:[%s5223_s8] sm:$0xff] }
 0x2d3   :  { %1201 = vmatprep.mubr.bf16.mxu1 %v3683_v45  ;;  %v3567_v45 = vpack.c.bf16 %v1659_v8, %v1658_v43 }
 0x2d5   :  { %3568 = vmatprep.subr.bf16.mxu1 %v3567_v45 }
 0x2d6   :  { %3570 = vmatpush3.bf16.msra.mxu1 %v3567_v45 }
 0x2da   :  { %1202 = vmatmul.mubr.bf16.gmra.mrb[80].mxu1 %v3685_v0 }
 0x2db   :  { %1209 = vmatprep.mubr.bf16.mxu1 %v3686_v33 }
 0x2e2   :  { %1210 = vmatmul.mubr.bf16.gmra.mrb[84].mxu1 %v3688_v40 }
 0x2e3   :  { %1217 = vmatprep.mubr.bf16.mxu1 %v3689_v49 }
 0x2ea   :  { %1218 = vmatmul.mubr.bf16.gmra.mrb[88].mxu1 %v3691_v44 }
 0x2eb   :  { %1225 = vmatprep.mubr.bf16.mxu1 %v3692_v35 }
 0x2f2   :  { %1226 = vmatmul.mubr.bf16.gmra.mrb[92].mxu1 %v3694_v1 }
 0x34d   :  { %v3111_v27 = vpop.f32.mrb[32].mxu1 }
 0x34e   :  { %v3112_v19 = vpop.f32.mrb[33].mxu1 }
 0x34f   :  { %v3113_v20 = vadd.f32 %v3112_v19, %v3111_v27  ;;  %v3114_v0 = vpop.f32.mrb[34].mxu1 }
 0x350   :  { %v3115_v33 = vpop.f32.mrb[35].mxu1 }
 0x351   :  { %v1234_v40 = vadd.f32 %v3113_v20, %v828_v6  ;;  %v3116_v49 = vadd.f32 %v3115_v33, %v3114_v0 }
 0x353   :  { %v1235_v44 = vadd.f32 %v3116_v49, %v829_v5  ;;  %3451 = vmatprep.mubr.msk.f32.mxu0 %vm1272_vm1, %v1234_v40 }
 0x355   :  { %v3117_v35 = vpop.f32.mrb[36].mxu1  ;;  %3452 = vmatmul.mubr.msk.f32.vlgmr.msra.gmra.mrb[64].mxu0 %vm1272_vm1, %v1235_v44 }
 0x356   :  { %v3118_v1 = vpop.f32.mrb[37].mxu1 }
 0x357   :  { %v3119_v43 = vadd.f32 %v3118_v1, %v3117_v35  ;;  %v3120_v27 = vpop.f32.mrb[38].mxu1 }
 0x358   :  { %v3121_v8 = vpop.f32.mrb[39].mxu1 }
 0x359   :  { %v1236_v19 = vadd.f32 %v3119_v43, %v830_v58  ;;  %v3122_v29 = vadd.f32 %v3121_v8, %v3120_v27 }
 0x35b   :  { %v1237_v16 = vadd.f32 %v3122_v29, %v831_v57  ;;  %3454 = vmatprep.mubr.msk.f32.mxu0 %vm1272_vm1, %v1236_v19 }
 0x35d   :  { %v3123_v15 = vpop.f32.mrb[40].mxu1  ;;  %3455 = vmatmul.mubr.msk.f32.gmra.mrb[66].mxu0 %vm1272_vm1, %v1237_v16 }
 0x35e   :  { %v3124_v5 = vpop.f32.mrb[41].mxu1 }
 0x35f   :  { %v3125_v6 = vadd.f32 %v3124_v5, %v3123_v15  ;;  %v3126_v45 = vpop.f32.mrb[42].mxu1 }
 0x360   :  { %v3127_v20 = vpop.f32.mrb[43].mxu1 }
 0x361   :  { %v1238_v0 = vadd.f32 %v3125_v6, %v832_v24  ;;  %v3128_v33 = vadd.f32 %v3127_v20, %v3126_v45 }
 0x363   :  { %v1239_v54 = vadd.f32 %v3128_v33, %v833_v23  ;;  %3457 = vmatprep.mubr.msk.f32.mxu0 %vm1272_vm1, %v1238_v0 }
 0x365   :  { %v3129_v53 = vpop.f32.mrb[44].mxu1  ;;  %3458 = vmatmul.mubr.msk.f32.gmra.mrb[68].mxu0 %vm1272_vm1, %v1239_v54 }
 0x366   :  { %v3130_v57 = vpop.f32.mrb[45].mxu1 }
 0x367   :  { %v3131_v58 = vadd.f32 %v3130_v57, %v3129_v53  ;;  %v3132_v29 = vpop.f32.mrb[46].mxu1 }
 0x368   :  { %v3133_v40 = vpop.f32.mrb[47].mxu1 }
 0x369   :  { %v1240_v49 = vadd.f32 %v3131_v58, %v834_v41  ;;  %v3134_v44 = vadd.f32 %v3133_v40, %v3132_v29 }
 0x36b   :  { %v1241_v60 = vadd.f32 %v3134_v44, %v835_v39  ;;  %3460 = vmatprep.mubr.msk.f32.mxu0 %vm1272_vm1, %v1240_v49 }
 0x36d   :  { %v3135_v59 = vpop.f32.mrb[48].mxu1  ;;  %3461 = vmatmul.mubr.msk.f32.gmra.mrb[70].mxu0 %vm1272_vm1, %v1241_v60  ;;  %v5251_v60 = vmax.f32 %v4353_v56, 0.0  ;;  %v5254_v56 = vmax.f32 %v4374_v62, 0.0  ;;  %v5255_v62 = vmax.f32 %v4401_v14, 0.0 }
 0x36e   :  { %v3136_v23 = vpop.f32.mrb[49].mxu1 }
 0x36f   :  { %v3137_v24 = vadd.f32 %v3136_v23, %v3135_v59  ;;  %v3138_v35 = vpop.f32.mrb[50].mxu1 }
 0x370   :  { %v3139_v1 = vpop.f32.mrb[51].mxu1 }
 0x371   :  { %v1242_v43 = vadd.f32 %v3137_v24, %v836_v46  ;;  %v3140_v27 = vadd.f32 %v3139_v1, %v3138_v35 }
 0x373   :  { %v1243_v2 = vadd.f32 %v3140_v27, %v837_v28  ;;  %3463 = vmatprep.mubr.msk.f32.mxu0 %vm1272_vm1, %v1242_v43  ;;  %v5253_v43 = vmax.f32 %v4377_v3, 0.0  ;;  %v1661_v3 = vld [vmem:[%s5223_s8 + $0x18] sm:$0xff] }
 0x375   :  { %v3141_v13 = vpop.f32.mrb[52].mxu1  ;;  %3464 = vmatmul.mubr.msk.f32.gmra.mrb[72].mxu0 %vm1272_vm1, %v1243_v2 }
 0x376   :  { %v3142_v39 = vpop.f32.mrb[53].mxu1 }
 0x377   :  { %v3143_v41 = vadd.f32 %v3142_v39, %v3141_v13  ;;  %v3144_v8 = vpop.f32.mrb[54].mxu1 }
 0x378   :  { %v3145_v19 = vpop.f32.mrb[55].mxu1 }
 0x379   :  { %v1244_v16 = vadd.f32 %v3143_v41, %v838_v7  ;;  %v3146_v15 = vadd.f32 %v3145_v19, %v3144_v8 }
 0x37b   :  { %v1245_v26 = vadd.f32 %v3146_v15, %v839_v63  ;;  %3466 = vmatprep.mubr.msk.f32.mxu0 %vm1272_vm1, %v1244_v16  ;;  %v1660_v16 = vld [vmem:[%s5223_s8 + $0x10] sm:$0xff] }
 0x37d   :  { %v3147_v25 = vpop.f32.mrb[56].mxu1  ;;  %3467 = vmatmul.mubr.msk.f32.gmra.mrb[74].mxu0 %vm1272_vm1, %v1245_v26 }
 0x37e   :  { %v3148_v28 = vpop.f32.mrb[57].mxu1 }
 0x37f   :  { %v3149_v46 = vadd.f32 %v3148_v28, %v3147_v25  ;;  %v3150_v5 = vpop.f32.mrb[58].mxu1  ;;  %v3571_v25 = vpack.c.bf16 %v1661_v3, %v1660_v16  ;;  %v5256_v28 = vmax.f32 %v4398_v31, 0.0 }
 0x380   :  { %v3151_v6 = vpop.f32.mrb[59].mxu1 }
 0x381   :  { %v1246_v45 = vadd.f32 %v3149_v46, %v840_v55  ;;  %v3152_v20 = vadd.f32 %v3151_v6, %v3150_v5  ;;  %3572 = vmatprep.subr.bf16.mxu1 %v3571_v25 }
 0x382   :  { %3574 = vmatpush3.bf16.msra.mxu1 %v3571_v25 }
 0x383   :  { %v1247_v11 = vadd.f32 %v3152_v20, %v841_v21  ;;  %3469 = vmatprep.mubr.msk.f32.mxu0 %vm1272_vm1, %v1246_v45 }
 0x385   :  { %v3153_v22 = vpop.f32.mrb[60].mxu1  ;;  %3470 = vmatmul.mubr.msk.f32.gmra.mrb[76].mxu0 %vm1272_vm1, %v1247_v11 }
 0x386   :  { %v3154_v63 = vpop.f32.mrb[61].mxu1 }
 0x387   :  { %v3155_v7 = vadd.f32 %v3154_v63, %v3153_v22  ;;  %v3156_v0 = vpop.f32.mrb[62].mxu1  ;;  %v5257_v22 = vmax.f32 %v4427_v47, 0.0  ;;  %v5260_v47 = vmax.f32 %v4450_v17, 0.0 }
 0x388   :  { %v3157_v33 = vpop.f32.mrb[63].mxu1 }
 0x389   :  { %v1248_v54 = vadd.f32 %v3155_v7, %v842_v32  ;;  %v3158_v53 = vadd.f32 %v3157_v33, %v3156_v0  ;;  %v5258_v7 = vmax.f32 %v4424_v10, 0.0 }
 0x38b   :  { %v1249_v36 = vadd.f32 %v3158_v53, %v843_v18  ;;  %3472 = vmatprep.mubr.msk.f32.mxu0 %vm1272_vm1, %v1248_v54 }
 0x38d   :  { %v3159_v4 = vpop.f32.mrb[64].mxu1  ;;  %3473 = vmatmul.mubr.msk.f32.gmra.mrb[78].mxu0 %vm1272_vm1, %v1249_v36 }
 0x38e   :  { %v3160_v21 = vpop.f32.mrb[65].mxu1 }
 0x38f   :  { %v3161_v55 = vadd.f32 %v3160_v21, %v3159_v4  ;;  %v3162_v57 = vpop.f32.mrb[66].mxu1  ;;  %v5259_v4 = vmax.f32 %v4453_v61, 0.0  ;;  %v5262_v61 = vmax.f32 %v4476_v9, 0.0  ;;  %v4642_v9 = vld [vmem:[%s5222_s7] ss:$0 sm:$0xff] }
 0x390   :  { %v3163_v58 = vpop.f32.mrb[67].mxu1 }
 0x391   :  { %v1250_v29 = vadd.f32 %v3161_v55, %v844_v52  ;;  %v3164_v40 = vadd.f32 %v3163_v58, %v3162_v57 }
 0x393   :  { %v1251_v32 = vadd.f32 %v3164_v40, %v845_v51  ;;  %3475 = vmatprep.mubr.msk.f32.mxu0 %vm1272_vm1, %v1250_v29 }
 0x395   :  { %v3165_v30 = vpop.f32.mrb[68].mxu1  ;;  %3476 = vmatmul.mubr.msk.f32.gmra.mrb[80].mxu0 %vm1272_vm1, %v1251_v32 }
 0x396   :  { %v3166_v18 = vpop.f32.mrb[69].mxu1 }
 0x397   :  { %v3167_v37 = vadd.f32 %v3166_v18, %v3165_v30  ;;  %v3168_v49 = vpop.f32.mrb[70].mxu1  ;;  %v5261_v30 = vmax.f32 %v4479_v42, 0.0  ;;  %v5264_v42 = vmax.f32 %v4502_v34, 0.0 }
 0x398   :  { %v3169_v44 = vpop.f32.mrb[71].mxu1 }
 0x399   :  { %v1252_v59 = vadd.f32 %v3167_v37, %v5251_v60  ;;  %v3170_v23 = vadd.f32 %v3169_v44, %v3168_v49 }
 0x39b   :  { %v1253_v52 = vadd.f32 %v3170_v23, %v5252_v50  ;;  %3478 = vmatprep.mubr.msk.f32.mxu0 %vm1272_vm1, %v1252_v59  ;;  %v5263_v50 = vmax.f32 %v4505_v38, 0.0 }
 0x39d   :  { %v3171_v48 = vpop.f32.mrb[72].mxu1  ;;  %3479 = vmatmul.mubr.msk.f32.gmra.mrb[82].mxu0 %vm1272_vm1, %v1253_v52 }
 0x39e   :  { %v3172_v51 = vpop.f32.mrb[73].mxu1 }
 0x39f   :  { %v3173_v24 = vadd.f32 %v3172_v51, %v3171_v48  ;;  %v3174_v35 = vpop.f32.mrb[74].mxu1 }
 0x3a0   :  { %v3175_v1 = vpop.f32.mrb[75].mxu1 }
 0x3a1   :  { %v1254_v27 = vadd.f32 %v3173_v24, %v5253_v43  ;;  %v3176_v2 = vadd.f32 %v3175_v1, %v3174_v35 }
 0x3a3   :  { %v1255_v13 = vadd.f32 %v3176_v2, %v5254_v56  ;;  %3481 = vmatprep.mubr.msk.f32.mxu0 %vm1272_vm1, %v1254_v27 }
 0x3a5   :  { %v3177_v12 = vpop.f32.mrb[76].mxu1  ;;  %3482 = vmatmul.mubr.msk.f32.gmra.mrb[84].mxu0 %vm1272_vm1, %v1255_v13 }
 0x3a6   :  { %v3178_v39 = vpop.f32.mrb[77].mxu1 }
 0x3a7   :  { %v3179_v41 = vadd.f32 %v3178_v39, %v3177_v12  ;;  %v3180_v8 = vpop.f32.mrb[78].mxu1 }
 0x3a8   :  { %v3181_v19 = vpop.f32.mrb[79].mxu1 }
 0x3a9   :  { %v1256_v15 = vadd.f32 %v3179_v41, %v5255_v62  ;;  %v3182_v26 = vadd.f32 %v3181_v19, %v3180_v8 }
 0x3ab   :  { %v1257_v46 = vadd.f32 %v3182_v26, %v5256_v28  ;;  %3484 = vmatprep.mubr.msk.f32.mxu0 %vm1272_vm1, %v1256_v15 }
 0x3ad   :  { %v3183_v5 = vpop.f32.mrb[80].mxu1  ;;  %3485 = vmatmul.mubr.msk.f32.gmra.mrb[86].mxu0 %vm1272_vm1, %v1257_v46 }
 0x3ae   :  { %v3184_v6 = vpop.f32.mrb[81].mxu1 }
 0x3af   :  { %v3185_v45 = vadd.f32 %v3184_v6, %v3183_v5  ;;  %v3186_v20 = vpop.f32.mrb[82].mxu1 }
 0x3b0   :  { %v3187_v11 = vpop.f32.mrb[83].mxu1 }
 0x3b1   :  { %v1258_v14 = vadd.f32 %v3185_v45, %v5257_v22  ;;  %v3188_v63 = vadd.f32 %v3187_v11, %v3186_v20 }
 0x3b3   :  { %v1259_v0 = vadd.f32 %v3188_v63, %v5258_v7  ;;  %3487 = vmatprep.mubr.msk.f32.mxu0 %vm1272_vm1, %v1258_v14 }
 0x3b5   :  { %v3189_v31 = vpop.f32.mrb[84].mxu1  ;;  %3488 = vmatmul.mubr.msk.f32.gmra.mrb[88].mxu0 %vm1272_vm1, %v1259_v0 }
 0x3b6   :  { %v3190_v33 = vpop.f32.mrb[85].mxu1 }
 0x3b7   :  { %v3191_v54 = vadd.f32 %v3190_v33, %v3189_v31  ;;  %v3192_v53 = vpop.f32.mrb[86].mxu1 }
 0x3b8   :  { %v3193_v36 = vpop.f32.mrb[87].mxu1 }
 0x3b9   :  { %v1260_v21 = vadd.f32 %v3191_v54, %v5259_v4  ;;  %v3194_v55 = vadd.f32 %v3193_v36, %v3192_v53 }
 0x3bb   :  { %v1261_v57 = vadd.f32 %v3194_v55, %v5260_v47  ;;  %3490 = vmatprep.mubr.msk.f32.mxu0 %vm1272_vm1, %v1260_v21 }
 0x3bd   :  { %v3195_v10 = vpop.f32.mrb[88].mxu1  ;;  %3491 = vmatmul.mubr.msk.f32.gmra.mrb[90].mxu0 %vm1272_vm1, %v1261_v57 }
 0x3be   :  { %v3196_v58 = vpop.f32.mrb[89].mxu1 }
 0x3bf   :  { %v3197_v29 = vadd.f32 %v3196_v58, %v3195_v10  ;;  %v3198_v40 = vpop.f32.mrb[90].mxu1 }
 0x3c0   :  { %v3199_v32 = vpop.f32.mrb[91].mxu1 }
 0x3c1   :  { %v1262_v18 = vadd.f32 %v3197_v29, %v5261_v30  ;;  %v3200_v37 = vadd.f32 %v3199_v32, %v3198_v40 }
 0x3c3   :  { %v1263_v49 = vadd.f32 %v3200_v37, %v5262_v61  ;;  %3493 = vmatprep.mubr.msk.f32.mxu0 %vm1272_vm1, %v1262_v18 }
 0x3c5   :  { %v3201_v17 = vpop.f32.mrb[92].mxu1  ;;  %3494 = vmatmul.mubr.msk.f32.gmra.mrb[92].mxu0 %vm1272_vm1, %v1263_v49 }
 0x3c6   :  { %v3202_v44 = vpop.f32.mrb[93].mxu1 }
 0x3c7   :  { %v3203_v60 = vadd.f32 %v3202_v44, %v3201_v17  ;;  %v3204_v59 = vpop.f32.mrb[94].mxu1 }
 0x3c8   :  { %v3205_v23 = vpop.f32.mrb[95].mxu1 }
 0x3c9   :  { %v1264_v52 = vadd.f32 %v3203_v60, %v5263_v50  ;;  %v3206_v48 = vadd.f32 %v3205_v23, %v3204_v59 }
 0x3cb   :  { %v1265_v51 = vadd.f32 %v3206_v48, %v5264_v42  ;;  %3496 = vmatprep.mubr.msk.f32.mxu0 %vm1272_vm1, %v1264_v52 }
 0x3cd   :  { %3497 = vmatmul.mubr.msk.f32.gmra.mrb[94].mxu0 %vm1272_vm1, %v1265_v51 }
 0x428   :  { %v3453_v24 = vpop.f32.mrb[64].mxu0 }
 0x429   :  { %v1441_v35 = vadd.f32 %v3453_v24, %v4642_v9  ;;  %v1435_v1 = vpop.f32.mrb[65].mxu0 }
 0x42a   :  { %v1436_v38 = vadd.f32 %v4642_v9, %v1435_v1 }
 0x42b   :  { %v1595_v27 = vmax.f32 %v1441_v35, 0.0 }
 0x42c   :  { %v1594_v43 = vmax.f32 %v1436_v38, 0.0 }
 0x42e   :  { %3507 = vmatprep.mubr.msk.f32.mxu1 %vm1272_vm1, %v1594_v43 }
 0x42f   :  { %3508 = vmatmul.mubr.msk.f32.vlgmr.msra.gmra.mrb[96].mxu1 %vm1272_vm1, %v1595_v27 }
 0x430   :  { %v3456_v34 = vpop.f32.mrb[66].mxu0 }
 0x431   :  { %v1451_v2 = vadd.f32 %v3456_v34, %v4642_v9  ;;  %v1445_v56 = vpop.f32.mrb[67].mxu0 }
 0x432   :  { %v1446_v13 = vadd.f32 %v4642_v9, %v1445_v56 }
 0x433   :  { %v1597_v39 = vmax.f32 %v1451_v2, 0.0 }
 0x434   :  { %v1596_v12 = vmax.f32 %v1446_v13, 0.0 }
 0x436   :  { %3510 = vmatprep.mubr.msk.f32.mxu1 %vm1272_vm1, %v1596_v12 }
 0x437   :  { %3511 = vmatmul.mubr.msk.f32.gmra.mrb[98].mxu1 %vm1272_vm1, %v1597_v39 }
 0x438   :  { %v3459_v41 = vpop.f32.mrb[68].mxu0 }
 0x439   :  { %v1461_v8 = vadd.f32 %v3459_v41, %v4642_v9  ;;  %v1455_v19 = vpop.f32.mrb[69].mxu0 }
 0x43a   :  { %v1456_v16 = vadd.f32 %v4642_v9, %v1455_v19 }
 0x43b   :  { %v1599_v62 = vmax.f32 %v1461_v8, 0.0 }
 0x43c   :  { %v1598_v3 = vmax.f32 %v1456_v16, 0.0 }
 0x43e   :  { %3513 = vmatprep.mubr.msk.f32.mxu1 %vm1272_vm1, %v1598_v3 }
 0x43f   :  { %3514 = vmatmul.mubr.msk.f32.gmra.mrb[100].mxu1 %vm1272_vm1, %v1599_v62 }
 0x440   :  { %v3462_v15 = vpop.f32.mrb[70].mxu0 }
 0x441   :  { %v1471_v26 = vadd.f32 %v3462_v15, %v4642_v9  ;;  %v1465_v25 = vpop.f32.mrb[71].mxu0 }
 0x442   :  { %v1466_v28 = vadd.f32 %v4642_v9, %v1465_v25 }
 0x443   :  { %v1601_v5 = vmax.f32 %v1471_v26, 0.0 }
 0x444   :  { %v1600_v46 = vmax.f32 %v1466_v28, 0.0 }
 0x446   :  { %3516 = vmatprep.mubr.msk.f32.mxu1 %vm1272_vm1, %v1600_v46 }
 0x447   :  { %3517 = vmatmul.mubr.msk.f32.gmra.mrb[102].mxu1 %vm1272_vm1, %v1601_v5 }
 0x448   :  { %v3465_v6 = vpop.f32.mrb[72].mxu0 }
 0x449   :  { %v1481_v45 = vadd.f32 %v3465_v6, %v4642_v9  ;;  %v1475_v20 = vpop.f32.mrb[73].mxu0 }
 0x44a   :  { %v1476_v11 = vadd.f32 %v4642_v9, %v1475_v20 }
 0x44b   :  { %v1603_v14 = vmax.f32 %v1481_v45, 0.0 }
 0x44c   :  { %v1602_v22 = vmax.f32 %v1476_v11, 0.0 }
 0x44e   :  { %3519 = vmatprep.mubr.msk.f32.mxu1 %vm1272_vm1, %v1602_v22 }
 0x44f   :  { %3520 = vmatmul.mubr.msk.f32.gmra.mrb[104].mxu1 %vm1272_vm1, %v1603_v14 }
 0x450   :  { %v3468_v63 = vpop.f32.mrb[74].mxu0 }
 0x451   :  { %v1491_v7 = vadd.f32 %v3468_v63, %v4642_v9  ;;  %v1485_v0 = vpop.f32.mrb[75].mxu0 }
 0x452   :  { %v1486_v31 = vadd.f32 %v4642_v9, %v1485_v0 }
 0x453   :  { %v1605_v54 = vmax.f32 %v1491_v7, 0.0 }
 0x454   :  { %v1604_v33 = vmax.f32 %v1486_v31, 0.0  ;;  %v3697_v31 = vld [vmem:[#allocation4 + $0x4] ss:$8 sps:$4 sm:$0xff]  }
 0x455   :  { %2196 = vmatprep.mubr.bf16.mxu0 %v3697_v31 }
 0x456   :  { %3522 = vmatprep.mubr.msk.f32.mxu1 %vm1272_vm1, %v1604_v33 }
 0x457   :  { %3523 = vmatmul.mubr.msk.f32.gmra.mrb[106].mxu1 %vm1272_vm1, %v1605_v54  ;;  %v3700_v54 = vld [vmem:[#allocation4 + $0xb4] ss:$8 sps:$4 sm:$0xff]  }
 0x458   :  { %v3471_v53 = vpop.f32.mrb[76].mxu0 }
 0x459   :  { %v1501_v36 = vadd.f32 %v3471_v53, %v4642_v9  ;;  %v1495_v4 = vpop.f32.mrb[77].mxu0 }
 0x45a   :  { %v1496_v21 = vadd.f32 %v4642_v9, %v1495_v4 }
 0x45b   :  { %v1607_v47 = vmax.f32 %v1501_v36, 0.0 }
 0x45c   :  { %v1606_v55 = vmax.f32 %v1496_v21, 0.0 }
 0x45e   :  { %3525 = vmatprep.mubr.msk.f32.mxu1 %vm1272_vm1, %v1606_v55 }
 0x45f   :  { %3526 = vmatmul.mubr.msk.f32.gmra.mrb[108].mxu1 %vm1272_vm1, %v1607_v47 }
 0x460   :  { %v3474_v57 = vpop.f32.mrb[78].mxu0 }
 0x461   :  { %v1511_v10 = vadd.f32 %v3474_v57, %v4642_v9  ;;  %v1505_v58 = vpop.f32.mrb[79].mxu0 }
 0x462   :  { %v1506_v29 = vadd.f32 %v4642_v9, %v1505_v58 }
 0x463   :  { %v1609_v32 = vmax.f32 %v1511_v10, 0.0 }
 0x464   :  { %v1608_v40 = vmax.f32 %v1506_v29, 0.0 }
 0x466   :  { %3528 = vmatprep.mubr.msk.f32.mxu1 %vm1272_vm1, %v1608_v40 }
 0x467   :  { %3529 = vmatmul.mubr.msk.f32.gmra.mrb[110].mxu1 %vm1272_vm1, %v1609_v32 }
 0x468   :  { %v3477_v30 = vpop.f32.mrb[80].mxu0 }
 0x469   :  { %v1521_v18 = vadd.f32 %v3477_v30, %v4642_v9  ;;  %v1515_v37 = vpop.f32.mrb[81].mxu0  ;;  %v1663_v30 = vlaneseq }
 0x46a   :  { %v1516_v61 = vadd.f32 %v4642_v9, %v1515_v37 }
 0x46b   :  { %v1611_v17 = vmax.f32 %v1521_v18, 0.0  ;;  %v1664_v18 = vand.u32 127, %v1663_v30 }
 0x46c   :  { %v1610_v49 = vmax.f32 %v1516_v61, 0.0 }
 0x46d   :  { %vm1665_vm2 = vcmp.eq.s32.totalorder %v1664_v18, 8 }
 0x46e   :  { %3531 = vmatprep.mubr.msk.f32.mxu1 %vm1272_vm1, %v1610_v49  ;;  %v3859_v49 = vmov 0.0  }
 0x46f   :  { %3532 = vmatmul.mubr.msk.f32.gmra.mrb[112].mxu1 %vm1272_vm1, %v1611_v17  ;;  %v4720_v17 = vsel %vm1665_vm2, 1.0, %v3859_v49 }
 0x470   :  { %v3480_v44 = vpop.f32.mrb[82].mxu0 }
 0x471   :  { %v1531_v60 = vadd.f32 %v3480_v44, %v4642_v9  ;;  %v1525_v59 = vpop.f32.mrb[83].mxu0 }
 0x472   :  { %v1526_v23 = vadd.f32 %v4642_v9, %v1525_v59 }
 0x473   :  { %v1613_v52 = vmax.f32 %v1531_v60, 0.0 }
 0x474   :  { %v1612_v50 = vmax.f32 %v1526_v23, 0.0 }
 0x476   :  { %3534 = vmatprep.mubr.msk.f32.mxu1 %vm1272_vm1, %v1612_v50 }
 0x477   :  { %3535 = vmatmul.mubr.msk.f32.gmra.mrb[114].mxu1 %vm1272_vm1, %v1613_v52 }
 0x478   :  { %v3483_v48 = vpop.f32.mrb[84].mxu0 }
 0x479   :  { %v1541_v42 = vadd.f32 %v3483_v48, %v4642_v9  ;;  %v1535_v51 = vpop.f32.mrb[85].mxu0 }
 0x47a   :  { %v1536_v24 = vadd.f32 %v4642_v9, %v1535_v51 }
 0x47b   :  { %v1615_v1 = vmax.f32 %v1541_v42, 0.0 }
 0x47c   :  { %v1614_v35 = vmax.f32 %v1536_v24, 0.0 }
 0x47e   :  { %3537 = vmatprep.mubr.msk.f32.mxu1 %vm1272_vm1, %v1614_v35 }
 0x47f   :  { %3538 = vmatmul.mubr.msk.f32.gmra.mrb[116].mxu1 %vm1272_vm1, %v1615_v1 }
 0x480   :  { %v3486_v38 = vpop.f32.mrb[86].mxu0 }
 0x481   :  { %v1551_v43 = vadd.f32 %v3486_v38, %v4642_v9  ;;  %v1545_v27 = vpop.f32.mrb[87].mxu0 }
 0x482   :  { %v1546_v34 = vadd.f32 %v4642_v9, %v1545_v27 }
 0x483   :  { %v1617_v56 = vmax.f32 %v1551_v43, 0.0 }
 0x484   :  { %v1616_v2 = vmax.f32 %v1546_v34, 0.0 }
 0x486   :  { %3540 = vmatprep.mubr.msk.f32.mxu1 %vm1272_vm1, %v1616_v2 }
 0x487   :  { %3541 = vmatmul.mubr.msk.f32.gmra.mrb[118].mxu1 %vm1272_vm1, %v1617_v56 }
 0x488   :  { %v3489_v13 = vpop.f32.mrb[88].mxu0 }
 0x489   :  { %v1561_v12 = vadd.f32 %v3489_v13, %v4642_v9  ;;  %v1555_v39 = vpop.f32.mrb[89].mxu0 }
 0x48a   :  { %v1556_v41 = vadd.f32 %v4642_v9, %v1555_v39 }
 0x48b   :  { %v1619_v19 = vmax.f32 %v1561_v12, 0.0 }
 0x48c   :  { %v1618_v8 = vmax.f32 %v1556_v41, 0.0 }
 0x48e   :  { %3543 = vmatprep.mubr.msk.f32.mxu1 %vm1272_vm1, %v1618_v8 }
 0x48f   :  { %3544 = vmatmul.mubr.msk.f32.gmra.mrb[120].mxu1 %vm1272_vm1, %v1619_v19 }
 0x490   :  { %v3492_v16 = vpop.f32.mrb[90].mxu0 }
 0x491   :  { %v1571_v3 = vadd.f32 %v3492_v16, %v4642_v9  ;;  %v1565_v62 = vpop.f32.mrb[91].mxu0 }
 0x492   :  { %v1566_v15 = vadd.f32 %v4642_v9, %v1565_v62 }
 0x493   :  { %v1621_v25 = vmax.f32 %v1571_v3, 0.0 }
 0x494   :  { %v1620_v26 = vmax.f32 %v1566_v15, 0.0 }
 0x496   :  { %3546 = vmatprep.mubr.msk.f32.mxu1 %vm1272_vm1, %v1620_v26 }
 0x497   :  { %3547 = vmatmul.mubr.msk.f32.gmra.mrb[122].mxu1 %vm1272_vm1, %v1621_v25 }
 0x498   :  { %v3495_v28 = vpop.f32.mrb[92].mxu0 }
 0x499   :  { %v1581_v46 = vadd.f32 %v3495_v28, %v4642_v9  ;;  %v1575_v5 = vpop.f32.mrb[93].mxu0 }
 0x49a   :  { %v1576_v6 = vadd.f32 %v4642_v9, %v1575_v5 }
 0x49b   :  { %v1623_v20 = vmax.f32 %v1581_v46, 0.0 }
 0x49c   :  { %v1622_v45 = vmax.f32 %v1576_v6, 0.0 }
 0x49e   :  { %3549 = vmatprep.mubr.msk.f32.mxu1 %vm1272_vm1, %v1622_v45 }
 0x49f   :  { %3550 = vmatmul.mubr.msk.f32.gmra.mrb[124].mxu1 %vm1272_vm1, %v1623_v20 }
 0x4a0   :  { %v3498_v11 = vpop.f32.mrb[94].mxu0 }
 0x4a1   :  { %v1591_v22 = vadd.f32 %v3498_v11, %v4642_v9  ;;  %v1585_v14 = vpop.f32.mrb[95].mxu0 }
 0x4a2   :  { %v1586_v63 = vadd.f32 %v4642_v9, %v1585_v14 }
 0x4a3   :  { %v1625_v0 = vmax.f32 %v1591_v22, 0.0 }
 0x4a4   :  { %v1624_v7 = vmax.f32 %v1586_v63, 0.0 }
 0x4a6   :  { %3552 = vmatprep.mubr.msk.f32.mxu1 %vm1272_vm1, %v1624_v7 }
 0x4a7   :  { %3553 = vmatmul.mubr.msk.f32.gmra.mrb[126].mxu1 %vm1272_vm1, %v1625_v0 }
 0x4a8   :  { %2284 = vmatprep.mubr.bf16.mxu1 %v3700_v54 }
 0x502   :  { %v3509_v33 = vpop.f32.mrb[96].mxu1 }
 0x503   :  { %v1829_v53 = vpop.f32.mrb[97].mxu1  ;;  %v4723_v60 = vadd.f32 %v3509_v33, %v4720_v17 }
 0x504   :  { %v4726_v59 = vadd.f32 %v1829_v53, %v4720_v17 }
 0x506   :  { %v1988_v42 = vpack.c.bf16 %v4723_v60, %v4726_v59 }
 0x50a   :  { %v3512_v36 = vpop.f32.mrb[98].mxu1 }
 0x50b   :  { %v1839_v4 = vpop.f32.mrb[99].mxu1  ;;  %v4739_v24 = vadd.f32 %v3512_v36, %v4720_v17 }
 0x50c   :  { %v4742_v35 = vadd.f32 %v1839_v4, %v4720_v17 }
 0x50e   :  { %v1989_v34 = vpack.c.bf16 %v4739_v24, %v4742_v35 }
 0x512   :  { %v3515_v21 = vpop.f32.mrb[100].mxu1 }
 0x513   :  { %v1849_v55 = vpop.f32.mrb[101].mxu1  ;;  %v4755_v56 = vadd.f32 %v3515_v21, %v4720_v17 }
 0x514   :  { %v4758_v13 = vadd.f32 %v1849_v55, %v4720_v17 }
 0x516   :  { %v1990_v19 = vpack.c.bf16 %v4755_v56, %v4758_v13 }
 0x51a   :  { %v3518_v47 = vpop.f32.mrb[102].mxu1 }
 0x51b   :  { %v1859_v57 = vpop.f32.mrb[103].mxu1  ;;  %v4771_v3 = vadd.f32 %v3518_v47, %v4720_v17 }
 0x51c   :  { %v4774_v62 = vadd.f32 %v1859_v57, %v4720_v17 }
 0x51e   :  { %v1991_v46 = vpack.c.bf16 %v4771_v3, %v4774_v62 }
 0x522   :  { %v3521_v10 = vpop.f32.mrb[104].mxu1 }
 0x523   :  { %v1869_v9 = vpop.f32.mrb[105].mxu1  ;;  %v4787_v6 = vadd.f32 %v3521_v10, %v4720_v17 }
 0x524   :  { %v4790_v45 = vadd.f32 %v1869_v9, %v4720_v17 }
 0x526   :  { %v1992_v63 = vpack.c.bf16 %v4787_v6, %v4790_v45 }
 0x52a   :  { %v4708_v58 = vpop.f32.mrb[106].mxu1 }
 0x52b   :  { %v4710_v29 = vpop.f32.mrb[107].mxu1  ;;  %v4804_v0 = vadd.f32 %v4708_v58, %v4720_v17 }
 0x52c   :  { %v4808_v31 = vadd.f32 %v4710_v29, %v4720_v17 }
 0x52e   :  { %v1993_v4 = vpack.c.bf16 %v4804_v0, %v4808_v31 }
 0x532   :  { %v4712_v40 = vpop.f32.mrb[108].mxu1 }
 0x533   :  { %v4714_v32 = vpop.f32.mrb[109].mxu1  ;;  %v4822_v55 = vadd.f32 %v4712_v40, %v4720_v17 }
 0x534   :  { %v4826_v47 = vadd.f32 %v4714_v32, %v4720_v17 }
 0x536   :  { %v1994_v29 = vpack.c.bf16 %v4822_v55, %v4826_v47 }
 0x53a   :  { %v4716_v37 = vpop.f32.mrb[110].mxu1 }
 0x53b   :  { %v4718_v61 = vpop.f32.mrb[111].mxu1  ;;  %v4840_v32 = vadd.f32 %v4716_v37, %v4720_v17  ;;  %v3695_v37 = vld [vmem:[#allocation4] ss:$8 sps:$4 sm:$0xff]  }
 0x53c   :  { %v4844_v30 = vadd.f32 %v4718_v61, %v4720_v17  ;;  %v3701_v61 = vld [vmem:[#allocation4 + $0x14] ss:$8 sps:$4 sm:$0xff]  }
 0x53d   :  { %5271 = vst [vmem:[#allocation14_spill] sm:$0xff] %v4840_v32 }
 0x53e   :  { %5272 = vst [vmem:[#allocation15_spill] sm:$0xff] %v4844_v30 }
 0x542   :  { %v3533_v44 = vpop.f32.mrb[112].mxu1 }
 0x543   :  { %v4729_v23 = vadd.f32 %v3533_v44, %v4720_v17  ;;  %v1909_v50 = vpop.f32.mrb[113].mxu1 }
 0x544   :  { %v4732_v52 = vadd.f32 %v1909_v50, %v4720_v17 }
 0x545   :  { %5265 = vst [vmem:[#allocation8_spill] sm:$0xff] %v4729_v23 }
 0x546   :  { %5266 = vst [vmem:[#allocation9_spill] sm:$0xff] %v4732_v52  ;;  %v1996_v48 = vpack.c.bf16 %v4729_v23, %v4732_v52 }
 0x548   :  { %3279 = vmatprep.subr.bf16.mxu0 %v1996_v48  ;;  %3575 = vmatprep.subr.bf16.mxu1 %v1996_v48  ;;  %v1995_v48 = vpack.c.bf16 %v4840_v32, %v4844_v30 }
 0x549   :  { %3280 = vmatpush3.bf16.msra.mxu0 %v1988_v42  ;;  %3583 = vmatpush3.bf16.msra.mxu1 %v1988_v42  ;;  %v3698_v42 = vld [vmem:[#allocation4 + $0xb0] ss:$8 sps:$4 sm:$0xff]  }
 0x54a   :  { %v3536_v51 = vpop.f32.mrb[114].mxu1 }
 0x54b   :  { %v4745_v1 = vadd.f32 %v3536_v51, %v4720_v17  ;;  %v1919_v38 = vpop.f32.mrb[115].mxu1  ;;  %v3704_v51 = vld [vmem:[#allocation4 + $0xc4] ss:$8 sps:$4 sm:$0xff]  }
 0x54c   :  { %v4748_v43 = vadd.f32 %v1919_v38, %v4720_v17  ;;  %v3706_v38 = vld [vmem:[#allocation4 + $0xc0] ss:$8 sps:$4 sm:$0xff]  }
 0x54d   :  { %5267 = vst [vmem:[#allocation10_spill] sm:$0xff] %v4745_v1 }
 0x54e   :  { %5268 = vst [vmem:[#allocation11_spill] sm:$0xff] %v4748_v43  ;;  %v1997_v27 = vpack.c.bf16 %v4745_v1, %v4748_v43 }
 0x550   :  { %3281 = vmatprep.subr.bf16.mxu0 %v1997_v27  ;;  %3576 = vmatprep.subr.bf16.mxu1 %v1997_v27  ;;  %v3707_v27 = vld [vmem:[#allocation4 + $0x24] ss:$8 sps:$4 sm:$0xff]  }
 0x551   :  { %3282 = vmatpush3.bf16.msra.mxu0 %v1989_v34  ;;  %3584 = vmatpush3.bf16.msra.mxu1 %v1989_v34  ;;  %v3710_v34 = vld [vmem:[#allocation4 + $0xd4] ss:$8 sps:$4 sm:$0xff]  }
 0x552   :  { %v3539_v2 = vpop.f32.mrb[116].mxu1 }
 0x553   :  { %v4761_v12 = vadd.f32 %v3539_v2, %v4720_v17  ;;  %v1929_v39 = vpop.f32.mrb[117].mxu1  ;;  %v3709_v2 = vld [vmem:[#allocation4 + $0x20] ss:$8 sps:$4 sm:$0xff]  }
 0x554   :  { %v4764_v41 = vadd.f32 %v1929_v39, %v4720_v17  ;;  %v3712_v39 = vld [vmem:[#allocation4 + $0xd0] ss:$8 sps:$4 sm:$0xff]  }
 0x555   :  { %5269 = vst [vmem:[#allocation12_spill] sm:$0xff] %v4761_v12 }
 0x556   :  { %5270 = vst [vmem:[#allocation13_spill] sm:$0xff] %v4764_v41  ;;  %v1998_v8 = vpack.c.bf16 %v4761_v12, %v4764_v41 }
 0x558   :  { %3283 = vmatprep.subr.bf16.mxu0 %v1998_v8  ;;  %3577 = vmatprep.subr.bf16.mxu1 %v1998_v8  ;;  %v3713_v8 = vld [vmem:[#allocation4 + $0x34] ss:$8 sps:$4 sm:$0xff]  }
 0x559   :  { %3284 = vmatpush3.bf16.msra.mxu0 %v1990_v19  ;;  %3585 = vmatpush3.bf16.msra.mxu1 %v1990_v19  ;;  %v3716_v19 = vld [vmem:[#allocation4 + $0xe4] ss:$8 sps:$4 sm:$0xff]  }
 0x55a   :  { %v3542_v16 = vpop.f32.mrb[118].mxu1 }
 0x55b   :  { %v4777_v15 = vadd.f32 %v3542_v16, %v4720_v17  ;;  %v1939_v26 = vpop.f32.mrb[119].mxu1  ;;  %v3715_v16 = vld [vmem:[#allocation4 + $0x30] ss:$8 sps:$4 sm:$0xff]  }
 0x55c   :  { %v4780_v25 = vadd.f32 %v1939_v26, %v4720_v17  ;;  %v3718_v26 = vld [vmem:[#allocation4 + $0xe0] ss:$8 sps:$4 sm:$0xff]  }
 0x55e   :  { %v1999_v28 = vpack.c.bf16 %v4777_v15, %v4780_v25 }
 0x560   :  { %3285 = vmatprep.subr.bf16.mxu0 %v1999_v28  ;;  %3578 = vmatprep.subr.bf16.mxu1 %v1999_v28  ;;  %v3719_v28 = vld [vmem:[#allocation4 + $0x44] ss:$8 sps:$4 sm:$0xff]  }
 0x561   :  { %3286 = vmatpush3.bf16.msra.mxu0 %v1991_v46  ;;  %3586 = vmatpush3.bf16.msra.mxu1 %v1991_v46  ;;  %v3737_v46 = vld [vmem:[#allocation4 + $0xf4] ss:$8 sps:$4 sm:$0xff]  }
 0x562   :  { %v3545_v5 = vpop.f32.mrb[120].mxu1 }
 0x563   :  { %v4793_v20 = vadd.f32 %v3545_v5, %v4720_v17  ;;  %v1949_v11 = vpop.f32.mrb[121].mxu1  ;;  %v3721_v5 = vld [vmem:[#allocation4 + $0x40] ss:$8 sps:$4 sm:$0xff]  }
 0x564   :  { %v4796_v22 = vadd.f32 %v1949_v11, %v4720_v17  ;;  %v3739_v11 = vld [vmem:[#allocation4 + $0xf0] ss:$8 sps:$4 sm:$0xff]  }
 0x566   :  { %v2000_v14 = vpack.c.bf16 %v4793_v20, %v4796_v22 }
 0x568   :  { %3287 = vmatprep.subr.bf16.mxu0 %v2000_v14  ;;  %3579 = vmatprep.subr.bf16.mxu1 %v2000_v14  ;;  %v3722_v14 = vld [vmem:[#allocation4 + $0x54] ss:$8 sps:$4 sm:$0xff]  }
 0x569   :  { %3288 = vmatpush3.bf16.msra.mxu0 %v1992_v63  ;;  %3587 = vmatpush3.bf16.msra.mxu1 %v1992_v63  ;;  %v3724_v63 = vld [vmem:[#allocation4 + $0x50] ss:$8 sps:$4 sm:$0xff]  }
 0x56a   :  { %v3548_v7 = vpop.f32.mrb[122].mxu1 }
 0x56b   :  { %v4811_v33 = vadd.f32 %v3548_v7, %v4720_v17  ;;  %v1959_v54 = vpop.f32.mrb[123].mxu1  ;;  %v3725_v7 = vld [vmem:[#allocation4 + $0x64] ss:$8 sps:$4 sm:$0xff]  }
 0x56c   :  { %v4814_v53 = vadd.f32 %v1959_v54, %v4720_v17  ;;  %v3727_v54 = vld [vmem:[#allocation4 + $0x60] ss:$8 sps:$4 sm:$0xff]  }
 0x56e   :  { %v2001_v36 = vpack.c.bf16 %v4811_v33, %v4814_v53 }
 0x570   :  { %3289 = vmatprep.subr.bf16.mxu0 %v2001_v36  ;;  %3580 = vmatprep.subr.bf16.mxu1 %v2001_v36  ;;  %v3728_v36 = vld [vmem:[#allocation4 + $0x74] ss:$8 sps:$4 sm:$0xff]  }
 0x571   :  { %3290 = vmatpush3.bf16.msra.mxu0 %v1993_v4  ;;  %3588 = vmatpush3.bf16.msra.mxu1 %v1993_v4  ;;  %v3730_v4 = vld [vmem:[#allocation4 + $0x70] ss:$8 sps:$4 sm:$0xff]  }
 0x572   :  { %v3551_v21 = vpop.f32.mrb[124].mxu1 }
 0x573   :  { %v4829_v57 = vadd.f32 %v3551_v21, %v4720_v17  ;;  %v1969_v10 = vpop.f32.mrb[125].mxu1  ;;  %v3731_v21 = vld [vmem:[#allocation4 + $0x84] ss:$8 sps:$4 sm:$0xff]  }
 0x574   :  { %v4832_v9 = vadd.f32 %v1969_v10, %v4720_v17  ;;  %v3733_v10 = vld [vmem:[#allocation4 + $0x80] ss:$8 sps:$4 sm:$0xff]  }
 0x576   :  { %v2002_v58 = vpack.c.bf16 %v4829_v57, %v4832_v9 }
 0x578   :  { %3291 = vmatprep.subr.bf16.mxu0 %v2002_v58  ;;  %3581 = vmatprep.subr.bf16.mxu1 %v2002_v58  ;;  %v3734_v58 = vld [vmem:[#allocation4 + $0x94] ss:$8 sps:$4 sm:$0xff]  }
 0x579   :  { %3292 = vmatpush3.bf16.msra.mxu0 %v1994_v29  ;;  %3589 = vmatpush3.bf16.msra.mxu1 %v1994_v29  ;;  %v3736_v29 = vld [vmem:[#allocation4 + $0x90] ss:$8 sps:$4 sm:$0xff]  }
 0x57a   :  { %v3554_v40 = vpop.f32.mrb[126].mxu1 }
 0x57b   :  { %v4847_v18 = vadd.f32 %v3554_v40, %v4720_v17  ;;  %v1979_v49 = vpop.f32.mrb[127].mxu1  ;;  %v3740_v40 = vld [vmem:[#allocation4 + $0xa4] ss:$8 sps:$4 sm:$0xff]  }
 0x57c   :  { %v4850_v44 = vadd.f32 %v1979_v49, %v4720_v17  ;;  %v3703_v17 = vld [vmem:[#allocation4 + $0x10] ss:$8 sps:$4 sm:$0xff]   ;;  %v3742_v49 = vld [vmem:[#allocation4 + $0xa0] ss:$8 sps:$4 sm:$0xff]  }
 0x57d   :  { %5273 = vst [vmem:[#allocation16_spill] sm:$0xff] %v4847_v18 }
 0x57e   :  { %5274 = vst [vmem:[#allocation17_spill] sm:$0xff] %v4850_v44  ;;  %v2003_v50 = vpack.c.bf16 %v4847_v18, %v4850_v44 }
 0x580   :  { %3293 = vmatprep.subr.bf16.mxu0 %v2003_v50  ;;  %3582 = vmatprep.subr.bf16.mxu1 %v2003_v50  ;;  %v3860_v50 = vmov 8  }
 0x581   :  { %3294 = vmatpush3.bf16.msra.mxu0 %v1995_v48  ;;  %3590 = vmatpush3.bf16.msra.mxu1 %v1995_v48 }
 0x582   :  { %3597 = vset.pattern.permute.xlu0 %v3860_v50  ;;  %3598 = vset.pattern.permute.xlu1 %v3860_v50 }
 0x584   :  { %2197 = vmatmul.mubr.bf16.vlgmr.msra.gmra.mrb[96].mxu0 %v3695_v37  ;;  %2285 = vmatmul.mubr.bf16.vlgmr.msra.gmra.mrb[128].mxu1 %v3698_v42 }
 0x585   :  { %2204 = vmatprep.mubr.bf16.mxu0 %v3701_v61  ;;  %2292 = vmatprep.mubr.bf16.mxu1 %v3704_v51 }
 0x58c   :  { %2205 = vmatmul.mubr.bf16.gmra.mrb[100].mxu0 %v3703_v17  ;;  %2293 = vmatmul.mubr.bf16.gmra.mrb[132].mxu1 %v3706_v38 }
 0x58d   :  { %2212 = vmatprep.mubr.bf16.mxu0 %v3707_v27  ;;  %2300 = vmatprep.mubr.bf16.mxu1 %v3710_v34 }
 0x594   :  { %2213 = vmatmul.mubr.bf16.gmra.mrb[104].mxu0 %v3709_v2  ;;  %2301 = vmatmul.mubr.bf16.gmra.mrb[136].mxu1 %v3712_v39 }
 0x595   :  { %2220 = vmatprep.mubr.bf16.mxu0 %v3713_v8  ;;  %2308 = vmatprep.mubr.bf16.mxu1 %v3716_v19 }
 0x59c   :  { %2221 = vmatmul.mubr.bf16.gmra.mrb[108].mxu0 %v3715_v16  ;;  %2309 = vmatmul.mubr.bf16.gmra.mrb[140].mxu1 %v3718_v26 }
 0x59d   :  { %2228 = vmatprep.mubr.bf16.mxu0 %v3719_v28  ;;  %2316 = vmatprep.mubr.bf16.mxu1 %v3737_v46 }
 0x5a4   :  { %2229 = vmatmul.mubr.bf16.gmra.mrb[112].mxu0 %v3721_v5  ;;  %2317 = vmatmul.mubr.bf16.gmra.mrb[144].mxu1 %v3739_v11 }
 0x5a5   :  { %2236 = vmatprep.mubr.bf16.mxu0 %v3722_v14 }
 0x5ac   :  { %2237 = vmatmul.mubr.bf16.gmra.mrb[116].mxu0 %v3724_v63 }
 0x5ad   :  { %2244 = vmatprep.mubr.bf16.mxu0 %v3725_v7 }
 0x5b4   :  { %2245 = vmatmul.mubr.bf16.gmra.mrb[120].mxu0 %v3727_v54 }
 0x5b5   :  { %2252 = vmatprep.mubr.bf16.mxu0 %v3728_v36 }
 0x5bc   :  { %2253 = vmatmul.mubr.bf16.gmra.mrb[124].mxu0 %v3730_v4 }
 0x5bd   :  { %2260 = vmatprep.mubr.bf16.mxu0 %v3731_v21 }
 0x5c4   :  { %2261 = vmatmul.mubr.bf16.gmra.mrb[128].mxu0 %v3733_v10 }
 0x5c5   :  { %2268 = vmatprep.mubr.bf16.mxu0 %v3734_v58 }
 0x5cc   :  { %2269 = vmatmul.mubr.bf16.gmra.mrb[132].mxu0 %v3736_v29 }
 0x5cd   :  { %2276 = vmatprep.mubr.bf16.mxu0 %v3740_v40 }
 0x5d4   :  { %2277 = vmatmul.mubr.bf16.gmra.mrb[136].mxu0 %v3742_v49 }
 0x657   :  { %v3295_v48 = vpop.f32.mrb[96].mxu0  ;;  %v3361_v37 = vpop.f32.mrb[128].mxu1 }
 0x658   :  { %v3296_v42 = vpop.f32.mrb[97].mxu0  ;;  %v3362_v61 = vpop.f32.mrb[129].mxu1 }
 0x659   :  { %v4856_v51 = vadd.f32 %v3296_v42, %v3295_v48  ;;  %v4858_v17 = vadd.f32 %v3362_v61, %v3361_v37  ;;  %v3298_v38 = vpop.f32.mrb[98].mxu0  ;;  %v3364_v27 = vpop.f32.mrb[130].mxu1 }
 0x65a   :  { %v3299_v34 = vpop.f32.mrb[99].mxu0  ;;  %v3365_v2 = vpop.f32.mrb[131].mxu1 }
 0x65b   :  { %v2357_v39 = vmax.f32 %v4856_v51, 1.0  ;;  %v2379_v8 = vmax.f32 %v4858_v17, 1.0  ;;  %v4862_v19 = vadd.f32 %v3299_v34, %v3298_v38  ;;  %v4864_v16 = vadd.f32 %v3365_v2, %v3364_v27 }
 0x65c   :  { %vm2325_vm3 = vcmp.gt.f32.partialorder %v4856_v51, 0.5  ;;  %vm2347_vm4 = vcmp.gt.f32.partialorder %v4858_v17, 0.5 }
 0x65d   :  { %3743 = vrcp.f32 %v2357_v39  ;;  %v2380_v26 = vmax.f32 %v4864_v16, 1.0  ;;  %v2358_v28 = vmax.f32 %v4862_v19, 1.0  ;;  %vm2348_vm5 = vcmp.gt.f32.partialorder %v4864_v16, 0.5 }
 0x65e   :  { %3745 = vrcp.f32 %v2379_v8  ;;  %vm2326_vm7 = vcmp.gt.f32.partialorder %v4862_v19, 0.5 }
 0x65f   :  { %v3301_v46 = vpop.f32.mrb[100].mxu0  ;;  %v3367_v5 = vpop.f32.mrb[132].mxu1  ;;  %3747 = vrcp.f32 %v2380_v26 }
 0x660   :  { %v3302_v11 = vpop.f32.mrb[101].mxu0  ;;  %v3368_v14 = vpop.f32.mrb[133].mxu1  ;;  %3749 = vrcp.f32 %v2358_v28 }
 0x661   :  { %v4868_v63 = vadd.f32 %v3302_v11, %v3301_v46  ;;  %v3304_v7 = vpop.f32.mrb[102].mxu0  ;;  %v4870_v54 = vadd.f32 %v3368_v14, %v3367_v5  ;;  %v3370_v36 = vpop.f32.mrb[134].mxu1 }
 0x662   :  { %v3305_v4 = vpop.f32.mrb[103].mxu0  ;;  %v3371_v21 = vpop.f32.mrb[135].mxu1 }
 0x663   :  { %v2359_v10 = vmax.f32 %v4868_v63, 1.0  ;;  %v4873_v58 = vadd.f32 %v3305_v4, %v3304_v7  ;;  %v2381_v29 = vmax.f32 %v4870_v54, 1.0  ;;  %v4876_v40 = vadd.f32 %v3371_v21, %v3370_v36 }
 0x664   :  { %vm2327_vm6 = vcmp.gt.f32.partialorder %v4868_v63, 0.5  ;;  %vm2349_vm8 = vcmp.gt.f32.partialorder %v4870_v54, 0.5 }
 0x665   :  { %3751 = vrcp.f32 %v2359_v10  ;;  %v2360_v49 = vmax.f32 %v4873_v58, 1.0  ;;  %v2382_v50 = vmax.f32 %v4876_v40, 1.0  ;;  %vm2328_vm9 = vcmp.gt.f32.partialorder %v4873_v58, 0.5 }
 0x666   :  { %3753 = vrcp.f32 %v2381_v29  ;;  %vm2350_vm10 = vcmp.gt.f32.partialorder %v4876_v40, 0.5 }
 0x667   :  { %v3744_v48 = vpop.eup %3743  ;;  %3755 = vrcp.f32 %v2360_v49  ;;  %v3307_v37 = vpop.f32.mrb[104].mxu0 }
 0x668   :  { %v3373_v42 = vpop.f32.mrb[136].mxu1  ;;  %v3746_v61 = vpop.eup %3745  ;;  %v2421_v27 = vsel %vm2325_vm3, %v3744_v48, 0.0  ;;  %3757 = vrcp.f32 %v2382_v50 }
 0x669   :  { %v3308_v38 = vpop.f32.mrb[105].mxu0  ;;  %v3374_v34 = vpop.f32.mrb[137].mxu1  ;;  %2455 = vperm.xlu0 %3597, %v2421_v27   ;;  %v2443_v5 = vsel %vm2347_vm4, %v3746_v61, 0.0 }
 0x66a   :  { %v4883_v2 = vadd.f32 %v3308_v38, %v3307_v37  ;;  %v3310_v39 = vpop.f32.mrb[106].mxu0  ;;  %v4885_v8 = vadd.f32 %v3374_v34, %v3373_v42  ;;  %v3376_v26 = vpop.f32.mrb[138].mxu1 }
 0x66b   :  { %v3748_v28 = vpop.eup %3747  ;;  %v3311_v46 = vpop.f32.mrb[107].mxu0 }
 0x66c   :  { %v3377_v11 = vpop.f32.mrb[139].mxu1  ;;  %v2361_v14 = vmax.f32 %v4883_v2, 1.0  ;;  %v4888_v7 = vadd.f32 %v3311_v46, %v3310_v39  ;;  %v2444_v36 = vsel %vm2348_vm5, %v3748_v28, 0.0  ;;  %v2383_v4 = vmax.f32 %v4885_v8, 1.0  ;;  %v3750_v21 = vpop.eup %3749 }
 0x66d   :  { %2570 = vperm.xlu1 %3598, %v2444_v36   ;;  %v4891_v10 = vadd.f32 %v3377_v11, %v3376_v26  ;;  %2565 = vperm.xlu0 %3597, %v2443_v5   ;;  %v2422_v27 = vsel %vm2326_vm7, %v3750_v21, 0.0  ;;  %vm2329_vm11 = vcmp.gt.f32.partialorder %v4883_v2, 0.5  ;;  %vm2351_vm12 = vcmp.gt.f32.partialorder %v4885_v8, 0.5 }
 0x66e   :  { %3759 = vrcp.f32 %v2361_v14  ;;  %v2362_v29 = vmax.f32 %v4888_v7, 1.0  ;;  %vm2330_vm13 = vcmp.gt.f32.partialorder %v4888_v7, 0.5 }
 0x66f   :  { %3761 = vrcp.f32 %v2383_v4  ;;  %v2384_v49 = vmax.f32 %v4891_v10, 1.0  ;;  %v3752_v50 = vpop.eup %3751  ;;  %v3313_v48 = vpop.f32.mrb[108].mxu0  ;;  %vm2352_vm14 = vcmp.gt.f32.partialorder %v4891_v10, 0.5 }
 0x670   :  { %3763 = vrcp.f32 %v2362_v29  ;;  %v3379_v37 = vpop.f32.mrb[140].mxu1  ;;  %v3754_v42 = vpop.eup %3753  ;;  %v2423_v38 = vsel %vm2327_vm6, %v3752_v50, 0.0 }
 0x671   :  { %v3314_v61 = vpop.f32.mrb[109].mxu0  ;;  %v3380_v34 = vpop.f32.mrb[141].mxu1  ;;  %3765 = vrcp.f32 %v2384_v49  ;;  %2465 = vperm.xlu1 %3598, %v2423_v38   ;;  %2460 = vperm.xlu0 %3597, %v2422_v27   ;;  %v2445_v14 = vsel %vm2349_vm8, %v3754_v42, 0.0 }
 0x672   :  { %v3756_v39 = vpop.eup %3755  ;;  %v4898_v26 = vadd.f32 %v3314_v61, %v3313_v48  ;;  %v3316_v28 = vpop.f32.mrb[110].mxu0  ;;  %v4900_v46 = vadd.f32 %v3380_v34, %v3379_v37 }
 0x673   :  { %v3382_v5 = vpop.f32.mrb[142].mxu1  ;;  %v3317_v11 = vpop.f32.mrb[111].mxu0  ;;  %v2424_v48 = vsel %vm2328_vm9, %v3756_v39, 0.0 }
 0x674   :  { %v3383_v36 = vpop.f32.mrb[143].mxu1  ;;  %v3758_v4 = vpop.eup %3757  ;;  %v2363_v21 = vmax.f32 %v4898_v26, 1.0  ;;  %v4907_v29 = vadd.f32 %v3317_v11, %v3316_v28  ;;  %v2385_v49 = vmax.f32 %v4900_v46, 1.0  ;;  %vm2331_vm15 = vcmp.gt.f32.partialorder %v4898_v26, 0.5 }
 0x675   :  { %v4910_v50 = vadd.f32 %v3383_v36, %v3382_v5  ;;  %2470 = vperm.xlu1 %3598, %v2424_v48   ;;  %2575 = vperm.xlu0 %3597, %v2445_v14   ;;  %v2446_v61 = vsel %vm2350_vm10, %v3758_v4, 0.0  ;;  %vm2353_vm0 = vcmp.gt.f32.partialorder %v4900_v46, 0.5 }
 0x676   :  { %3767 = vrcp.f32 %v2363_v21  ;;  %v2364_v37 = vmax.f32 %v4907_v29, 1.0  ;;  %vm2332_vm1 = vcmp.gt.f32.partialorder %v4907_v29, 0.5 }
 0x677   :  { %v2386_v42 = vmax.f32 %v4910_v50, 1.0  ;;  %3769 = vrcp.f32 %v2385_v49  ;;  %v3319_v27 = vpop.f32.mrb[112].mxu0  ;;  %v3385_v34 = vpop.f32.mrb[144].mxu1  ;;  %vm2354_vm2 = vcmp.gt.f32.partialorder %v4910_v50, 0.5 }
 0x678   :  { %v3760_v38 = vpop.eup %3759  ;;  %3771 = vrcp.f32 %v2364_v37  ;;  %v3320_v5 = vpop.f32.mrb[113].mxu0 }
 0x679   :  { %v3762_v28 = vpop.eup %3761  ;;  %v2425_v39 = vsel %vm2329_vm11, %v3760_v38, 0.0  ;;  %v3386_v11 = vpop.f32.mrb[145].mxu1  ;;  %v4916_v21 = vadd.f32 %v3320_v5, %v3319_v27  ;;  %3773 = vrcp.f32 %v2386_v42  ;;  %2580 = vperm.xlu1 %3598, %v2446_v61  }
 0x67a   :  { %v3764_v36 = vpop.eup %3763  ;;  %v3322_v14 = vpop.f32.mrb[114].mxu0  ;;  %2475 = vperm.xlu0 %3597, %v2425_v39   ;;  %v4918_v4 = vadd.f32 %v3386_v11, %v3385_v34  ;;  %v2447_v37 = vsel %vm2351_vm12, %v3762_v28, 0.0 }
 0x67b   :  { %v3388_v49 = vpop.f32.mrb[146].mxu1  ;;  %v3323_v48 = vpop.f32.mrb[115].mxu0  ;;  %v2365_v12 = vmax.f32 %v4916_v21, 1.0  ;;  %v2426_v38 = vsel %vm2330_vm13, %v3764_v36, 0.0  ;;  %vm2333_vm3 = vcmp.gt.f32.partialorder %v4916_v21, 0.5 }
 0x67c   :  { %v3389_v18 = vpop.f32.mrb[147].mxu1  ;;  %v3766_v44 = vpop.eup %3765  ;;  %v4921_v41 = vadd.f32 %v3323_v48, %v3322_v14 }
 0x67d   :  { %v4925_v42 = vadd.f32 %v3389_v18, %v3388_v49  ;;  %3775 = vrcp.f32 %v2365_v12  ;;  %2480 = vperm.xlu1 %3598, %v2426_v38   ;;  %v2448_v27 = vsel %vm2352_vm14, %v3766_v44, 0.0 }
 0x67e   :  { %v2366_v61 = vmax.f32 %v4921_v41, 1.0  ;;  %2585 = vperm.xlu0 %3597, %v2447_v37   ;;  %vm2334_vm4 = vcmp.gt.f32.partialorder %v4921_v41, 0.5 }
 0x67f   :  { %v3325_v28 = vpop.f32.mrb[116].mxu0 }
 0x680   :  { %v3768_v34 = vpop.eup %3767  ;;  %3777 = vrcp.f32 %v2366_v61  ;;  %v3326_v39 = vpop.f32.mrb[117].mxu0 }
 0x681   :  { %v3770_v5 = vpop.eup %3769  ;;  %v2427_v11 = vsel %vm2331_vm15, %v3768_v34, 0.0  ;;  %v4930_v36 = vadd.f32 %v3326_v39, %v3325_v28  ;;  %v3328_v18 = vpop.f32.mrb[118].mxu0  ;;  %2590 = vperm.xlu1 %3598, %v2448_v27  }
 0x682   :  { %v3772_v14 = vpop.eup %3771  ;;  %2485 = vperm.xlu0 %3597, %v2427_v11   ;;  %v3329_v12 = vpop.f32.mrb[119].mxu0  ;;  %v2449_v49 = vsel %vm2353_vm0, %v3770_v5, 0.0 }
 0x683   :  { %v3774_v48 = vpop.eup %3773  ;;  %v2367_v44 = vmax.f32 %v4930_v36, 1.0  ;;  %v4933_v37 = vadd.f32 %v3329_v12, %v3328_v18  ;;  %v2428_v38 = vsel %vm2332_vm1, %v3772_v14, 0.0  ;;  %vm2335_vm5 = vcmp.gt.f32.partialorder %v4930_v36, 0.5 }
 0x684   :  { %v2450_v34 = vsel %vm2354_vm2, %v3774_v48, 0.0  ;;  %vm2355_vm1 = vcmp.gt.f32.partialorder %v4918_v4, 0.5  ;;  %vm2356_vm2 = vcmp.gt.f32.partialorder %v4925_v42, 0.5 }
 0x685   :  { %3779 = vrcp.f32 %v2367_v44  ;;  %v2368_v61 = vmax.f32 %v4933_v37, 1.0  ;;  %2490 = vperm.xlu1 %3598, %v2428_v38   ;;  %vm2336_vm6 = vcmp.gt.f32.partialorder %v4933_v37, 0.5 }
 0x686   :  { %2595 = vperm.xlu0 %3597, %v2449_v49  }
 0x687   :  { %v3776_v27 = vpop.eup %3775  ;;  %3781 = vrcp.f32 %v2368_v61  ;;  %v3331_v28 = vpop.f32.mrb[120].mxu0 }
 0x688   :  { %v3332_v5 = vpop.f32.mrb[121].mxu0  ;;  %v2429_v39 = vsel %vm2333_vm3, %v3776_v27, 0.0  ;;  %vm2715_vm3 = vcmask 64512  }
 0x689   :  { %v4939_v18 = vadd.f32 %v3332_v5, %v3331_v28  ;;  %v3334_v12 = vpop.f32.mrb[122].mxu0  ;;  %2600 = vperm.xlu1 %3598, %v2450_v34  }
 0x68a   :  { %v3778_v11 = vpop.eup %3777  ;;  %2495 = vperm.xlu0 %3597, %v2429_v39   ;;  %v3335_v14 = vpop.f32.mrb[123].mxu0 }
 0x68b   :  { %v2369_v44 = vmax.f32 %v4939_v18, 1.0  ;;  %v4942_v1 = vadd.f32 %v3335_v14, %v3334_v12  ;;  %v2430_v49 = vsel %vm2334_vm4, %v3778_v11, 0.0  ;;  %vm2337_vm7 = vcmp.gt.f32.partialorder %v4939_v18, 0.5 }
 0x68d   :  { %3783 = vrcp.f32 %v2369_v44  ;;  %v2370_v48 = vmax.f32 %v4942_v1, 1.0  ;;  %2500 = vperm.xlu1 %3598, %v2430_v49   ;;  %vm2338_vm8 = vcmp.gt.f32.partialorder %v4942_v1, 0.5 }
 0x68f   :  { %v3780_v38 = vpop.eup %3779  ;;  %3785 = vrcp.f32 %v2370_v48  ;;  %v3337_v61 = vpop.f32.mrb[124].mxu0 }
 0x690   :  { %v3338_v27 = vpop.f32.mrb[125].mxu0  ;;  %v2431_v34 = vsel %vm2335_vm5, %v3780_v38, 0.0 }
 0x691   :  { %v3782_v28 = vpop.eup %3781  ;;  %v4947_v5 = vadd.f32 %v3338_v27, %v3337_v61  ;;  %v3340_v39 = vpop.f32.mrb[126].mxu0  ;;  %2505 = vperm.xlu0 %3597, %v2431_v34  }
 0x692   :  { %v3341_v12 = vpop.f32.mrb[127].mxu0  ;;  %v2432_v11 = vsel %vm2336_vm6, %v3782_v28, 0.0 }
 0x693   :  { %v2371_v14 = vmax.f32 %v4947_v5, 1.0  ;;  %v4951_v44 = vadd.f32 %v3341_v12, %v3340_v39  ;;  %2510 = vperm.xlu1 %3598, %v2432_v11   ;;  %vm2339_vm9 = vcmp.gt.f32.partialorder %v4947_v5, 0.5 }
 0x695   :  { %5275 = vst [vmem:[#allocation18_spill] sm:$0xff] %v4951_v44  ;;  %3787 = vrcp.f32 %v2371_v14  ;;  %v2372_v49 = vmax.f32 %v4951_v44, 1.0  ;;  %vm2340_vm10 = vcmp.gt.f32.partialorder %v4951_v44, 0.5 }
 0x697   :  { %v3784_v48 = vpop.eup %3783  ;;  %3789 = vrcp.f32 %v2372_v49  ;;  %v3343_v38 = vpop.f32.mrb[128].mxu0 }
 0x698   :  { %v3344_v61 = vpop.f32.mrb[129].mxu0  ;;  %v2433_v27 = vsel %vm2337_vm7, %v3784_v48, 0.0 }
 0x699   :  { %v3786_v34 = vpop.eup %3785  ;;  %v4955_v43 = vadd.f32 %v3344_v61, %v3343_v38  ;;  %v3346_v23 = vpop.f32.mrb[130].mxu0  ;;  %2515 = vperm.xlu0 %3597, %v2433_v27  }
 0x69a   :  { %v3347_v28 = vpop.f32.mrb[131].mxu0  ;;  %v2434_v39 = vsel %vm2338_vm8, %v3786_v34, 0.0 }
 0x69b   :  { %v2373_v12 = vmax.f32 %v4955_v43, 1.0  ;;  %v4959_v11 = vadd.f32 %v3347_v28, %v3346_v23  ;;  %2520 = vperm.xlu1 %3598, %v2434_v39   ;;  %vm2341_vm11 = vcmp.gt.f32.partialorder %v4955_v43, 0.5 }
 0x69d   :  { %3791 = vrcp.f32 %v2373_v12  ;;  %v2374_v14 = vmax.f32 %v4959_v11, 1.0  ;;  %vm2342_vm12 = vcmp.gt.f32.partialorder %v4959_v11, 0.5 }
 0x69f   :  { %v3788_v49 = vpop.eup %3787  ;;  %3793 = vrcp.f32 %v2374_v14  ;;  %v3349_v48 = vpop.f32.mrb[132].mxu0 }
 0x6a0   :  { %v3350_v38 = vpop.f32.mrb[133].mxu0  ;;  %v2435_v61 = vsel %vm2339_vm9, %v3788_v49, 0.0 }
 0x6a1   :  { %v3790_v27 = vpop.eup %3789  ;;  %v4963_v52 = vadd.f32 %v3350_v38, %v3349_v48  ;;  %v3352_v32 = vpop.f32.mrb[134].mxu0  ;;  %2525 = vperm.xlu0 %3597, %v2435_v61  }
 0x6a2   :  { %v3353_v23 = vpop.f32.mrb[135].mxu0  ;;  %v2436_v34 = vsel %vm2340_vm10, %v3790_v27, 0.0 }
 0x6a3   :  { %v2375_v28 = vmax.f32 %v4963_v52, 1.0  ;;  %v4967_v39 = vadd.f32 %v3353_v23, %v3352_v32  ;;  %2530 = vperm.xlu1 %3598, %v2436_v34   ;;  %v2387_v32 = vmax.f32 %v4918_v4, 1.0  ;;  %vm2343_vm13 = vcmp.gt.f32.partialorder %v4963_v52, 0.5 }
 0x6a5   :  { %3795 = vrcp.f32 %v2375_v28  ;;  %v2376_v12 = vmax.f32 %v4967_v39, 1.0  ;;  %vm2344_vm14 = vcmp.gt.f32.partialorder %v4967_v39, 0.5 }
 0x6a7   :  { %v3792_v14 = vpop.eup %3791  ;;  %3797 = vrcp.f32 %v2376_v12  ;;  %v3355_v49 = vpop.f32.mrb[136].mxu0  ;;  %v2388_v12 = vmax.f32 %v4925_v42, 1.0 }
 0x6a8   :  { %v3356_v48 = vpop.f32.mrb[137].mxu0  ;;  %v2437_v38 = vsel %vm2341_vm11, %v3792_v14, 0.0 }
 0x6a9   :  { %v3794_v61 = vpop.eup %3793  ;;  %v4971_v30 = vadd.f32 %v3356_v48, %v3355_v49  ;;  %v3358_v44 = vpop.f32.mrb[138].mxu0  ;;  %2535 = vperm.xlu0 %3597, %v2437_v38  }
 0x6aa   :  { %v3359_v27 = vpop.f32.mrb[139].mxu0  ;;  %v2438_v23 = vsel %vm2342_vm12, %v3794_v61, 0.0 }
 0x6ab   :  { %v2377_v34 = vmax.f32 %v4971_v30, 1.0  ;;  %v4976_v28 = vadd.f32 %v3359_v27, %v3358_v44  ;;  %2540 = vperm.xlu1 %3598, %v2438_v23   ;;  %vm2345_vm15 = vcmp.gt.f32.partialorder %v4971_v30, 0.5 }
 0x6ad   :  { %3799 = vrcp.f32 %v2377_v34  ;;  %v2378_v14 = vmax.f32 %v4976_v28, 1.0  ;;  %vm2346_vm0 = vcmp.gt.f32.partialorder %v4976_v28, 0.5 }
 0x6ae   :  { %3801 = vrcp.f32 %v2387_v32 }
 0x6af   :  { %v3796_v49 = vpop.eup %3795  ;;  %3803 = vrcp.f32 %v2378_v14 }
 0x6b0   :  { %v2439_v48 = vsel %vm2343_vm13, %v3796_v49, 0.0  ;;  %3805 = vrcp.f32 %v2388_v12 }
 0x6b1   :  { %v3798_v38 = vpop.eup %3797  ;;  %2545 = vperm.xlu0 %3597, %v2439_v48  }
 0x6b2   :  { %v2440_v61 = vsel %vm2344_vm14, %v3798_v38, 0.0 }
 0x6b3   :  { %2550 = vperm.xlu1 %3598, %v2440_v61   ;;  %v4990_v61 = vld [vmem:[%s5224_s9] ss:$0 sm:$0xff] }
 0x6b7   :  { %v3800_v44 = vpop.eup %3799 }
 0x6b8   :  { %v3802_v27 = vpop.eup %3801  ;;  %v2441_v23 = vsel %vm2345_vm15, %v3800_v44, 0.0 }
 0x6b9   :  { %v3804_v34 = vpop.eup %3803  ;;  %2555 = vperm.xlu0 %3597, %v2441_v23   ;;  %v2451_v12 = vsel %vm2355_vm1, %v3802_v27, 0.0 }
 0x6ba   :  { %v2442_v32 = vsel %vm2346_vm0, %v3804_v34, 0.0  ;;  %v3806_v14 = vpop.eup %3805 }
 0x6bb   :  { %2560 = vperm.xlu1 %3598, %v2442_v32   ;;  %v2452_v49 = vsel %vm2356_vm2, %v3806_v14, 0.0 }
 0x6bd   :  { %2605 = vperm.xlu0 %3597, %v2451_v12  }
 0x6bf   :  { %2610 = vperm.xlu1 %3598, %v2452_v49  }
 0x6e8   :  { %v2456_v48 = vpop.permute.xlu0 %2455 }
 0x6e9   :  { %v2613_v38 = vmul.f32 %v4856_v51, %v2456_v48 }
 0x6eb   :  { %v2645_v44 = vadd.f32 %v2613_v38, %v4726_v59 }
 0x6ec   :  { %v2571_v23 = vpop.permute.xlu1 %2570  ;;  %v2566_v32 = vpop.permute.xlu0 %2565 }
 0x6ed   :  { %v2636_v34 = vmul.f32 %v4864_v16, %v2571_v23  ;;  %v2683_v27 = vadd.f32 %v4990_v61, %v2645_v44  ;;  %v2635_v14 = vmul.f32 %v4858_v17, %v2566_v32 }
 0x6ef   :  { %v2668_v12 = vadd.f32 %v2636_v34, %v4777_v15  ;;  %2716 = vst.msk [vmem:[%s5225_s10] sm:$0xff] %vm2715_vm3, %v2683_v27  ;;  %v2667_v51 = vadd.f32 %v2635_v14, %v4780_v25 }
 0x6f0   :  { %v2466_v49 = vpop.permute.xlu1 %2465  ;;  %v2461_v48 = vpop.permute.xlu0 %2460 }
 0x6f1   :  { %v2706_v59 = vadd.f32 %v4990_v61, %v2668_v12  ;;  %v2705_v16 = vadd.f32 %v4990_v61, %v2667_v51  ;;  %v2615_v38 = vmul.f32 %v4868_v63, %v2466_v49  ;;  %v2614_v44 = vmul.f32 %v4862_v19, %v2461_v48 }
 0x6f3   :  { %2739 = vst.msk [vmem:[%s5225_s10 + $0xb8] sm:$0xff] %vm2715_vm3, %v2706_v59  ;;  %2738 = vst.msk [vmem:[%s5225_s10 + $0xb0] sm:$0xff] %vm2715_vm3, %v2705_v16  ;;  %v2647_v15 = vadd.f32 %v2615_v38, %v4742_v35  ;;  %v2646_v25 = vadd.f32 %v2614_v44, %v4723_v60 }
 0x6f4   :  { %v2471_v17 = vpop.permute.xlu1 %2470  ;;  %v2576_v23 = vpop.permute.xlu0 %2575 }
 0x6f5   :  { %v2685_v63 = vadd.f32 %v4990_v61, %v2647_v15  ;;  %v2684_v19 = vadd.f32 %v4990_v61, %v2646_v25  ;;  %v2616_v34 = vmul.f32 %v4873_v58, %v2471_v17  ;;  %v2637_v32 = vmul.f32 %v4870_v54, %v2576_v23 }
 0x6f7   :  { %2718 = vst.msk [vmem:[%s5225_s10 + $0x10] sm:$0xff] %vm2715_vm3, %v2685_v63  ;;  %2717 = vst.msk [vmem:[%s5225_s10 + $0x8] sm:$0xff] %vm2715_vm3, %v2684_v19  ;;  %v2648_v60 = vadd.f32 %v2616_v34, %v4739_v24  ;;  %v2669_v35 = vadd.f32 %v2637_v32, %v4796_v22 }
 0x6f8   :  { %v2581_v27 = vpop.permute.xlu1 %2580 }
 0x6f9   :  { %v2476_v14 = vpop.permute.xlu0 %2475  ;;  %v2686_v58 = vadd.f32 %v4990_v61, %v2648_v60  ;;  %v2707_v54 = vadd.f32 %v4990_v61, %v2669_v35  ;;  %v2638_v12 = vmul.f32 %v4876_v40, %v2581_v27 }
 0x6fa   :  { %v2617_v51 = vmul.f32 %v4883_v2, %v2476_v14 }
 0x6fb   :  { %2719 = vst.msk [vmem:[%s5225_s10 + $0x18] sm:$0xff] %vm2715_vm3, %v2686_v58  ;;  %2740 = vst.msk [vmem:[%s5225_s10 + $0xc0] sm:$0xff] %vm2715_vm3, %v2707_v54  ;;  %v2670_v24 = vadd.f32 %v2638_v12, %v4793_v20 }
 0x6fc   :  { %v2649_v22 = vadd.f32 %v2617_v51, %v4758_v13  ;;  %v2481_v59 = vpop.permute.xlu1 %2480 }
 0x6fd   :  { %v2586_v49 = vpop.permute.xlu0 %2585  ;;  %v2708_v40 = vadd.f32 %v4990_v61, %v2670_v24  ;;  %v2618_v48 = vmul.f32 %v4888_v7, %v2481_v59 }
 0x6fe   :  { %v2687_v2 = vadd.f32 %v4990_v61, %v2649_v22  ;;  %v2639_v16 = vmul.f32 %v4885_v8, %v2586_v49 }
 0x6ff   :  { %2741 = vst.msk [vmem:[%s5225_s10 + $0xc8] sm:$0xff] %vm2715_vm3, %v2708_v40  ;;  %v2650_v13 = vadd.f32 %v2618_v48, %v4755_v56 }
 0x700   :  { %2720 = vst.msk [vmem:[%s5225_s10 + $0x20] sm:$0xff] %vm2715_vm3, %v2687_v2  ;;  %v2671_v20 = vadd.f32 %v2639_v16, %v4814_v53  ;;  %v2591_v38 = vpop.permute.xlu1 %2590 }
 0x701   :  { %v2486_v44 = vpop.permute.xlu0 %2485  ;;  %v2688_v7 = vadd.f32 %v4990_v61, %v2650_v13  ;;  %v2640_v15 = vmul.f32 %v4891_v10, %v2591_v38  ;;  %v5277_v13 = vld [vmem:[#allocation18_spill] sm:$0xff] }
 0x702   :  { %v2709_v8 = vadd.f32 %v4990_v61, %v2671_v20  ;;  %v2619_v25 = vmul.f32 %v4898_v26, %v2486_v44  ;;  %v5278_v38 = vld [vmem:[#allocation14_spill] sm:$0xff] }
 0x703   :  { %2721 = vst.msk [vmem:[%s5225_s10 + $0x28] sm:$0xff] %vm2715_vm3, %v2688_v7  ;;  %v2672_v56 = vadd.f32 %v2640_v15, %v4811_v33 }
 0x704   :  { %2742 = vst.msk [vmem:[%s5225_s10 + $0xd0] sm:$0xff] %vm2715_vm3, %v2709_v8  ;;  %v2651_v53 = vadd.f32 %v2619_v25, %v4774_v62  ;;  %v2491_v17 = vpop.permute.xlu1 %2490  ;;  %v5279_v25 = vld [vmem:[#allocation9_spill] sm:$0xff] }
 0x705   :  { %v2596_v23 = vpop.permute.xlu0 %2595  ;;  %v2710_v10 = vadd.f32 %v4990_v61, %v2672_v56  ;;  %v2620_v63 = vmul.f32 %v4907_v29, %v2491_v17 }
 0x706   :  { %v2689_v26 = vadd.f32 %v4990_v61, %v2651_v53  ;;  %v2641_v19 = vmul.f32 %v4900_v46, %v2596_v23  ;;  %v5280_v23 = vld [vmem:[#allocation8_spill] sm:$0xff] }
 0x707   :  { %2743 = vst.msk [vmem:[%s5225_s10 + $0xd8] sm:$0xff] %vm2715_vm3, %v2710_v10  ;;  %v2652_v62 = vadd.f32 %v2620_v63, %v4771_v3 }
 0x708   :  { %2722 = vst.msk [vmem:[%s5225_s10 + $0x30] sm:$0xff] %vm2715_vm3, %v2689_v26  ;;  %v2673_v33 = vadd.f32 %v2641_v19, %v4832_v9  ;;  %v2601_v34 = vpop.permute.xlu1 %2600  ;;  %v5281_v19 = vld [vmem:[#allocation11_spill] sm:$0xff] }
 0x709   :  { %v2496_v32 = vpop.permute.xlu0 %2495  ;;  %v2690_v29 = vadd.f32 %v4990_v61, %v2652_v62  ;;  %v2642_v60 = vmul.f32 %v4910_v50, %v2601_v34 }
 0x70a   :  { %v2711_v46 = vadd.f32 %v4990_v61, %v2673_v33  ;;  %v2621_v35 = vmul.f32 %v4916_v21, %v2496_v32  ;;  %v5282_v32 = vld [vmem:[#allocation10_spill] sm:$0xff] }
 0x70b   :  { %2723 = vst.msk [vmem:[%s5225_s10 + $0x38] sm:$0xff] %vm2715_vm3, %v2690_v29  ;;  %v2674_v3 = vadd.f32 %v2642_v60, %v4829_v57 }
 0x70c   :  { %2744 = vst.msk [vmem:[%s5225_s10 + $0xe0] sm:$0xff] %vm2715_vm3, %v2711_v46  ;;  %v2653_v9 = vadd.f32 %v2621_v35, %v4790_v45  ;;  %v2501_v27 = vpop.permute.xlu1 %2500  ;;  %v5283_v35 = vld [vmem:[#allocation13_spill] sm:$0xff] }
 0x70d   :  { %v2712_v14 = vadd.f32 %v4990_v61, %v2674_v3  ;;  %v2622_v21 = vmul.f32 %v4921_v41, %v2501_v27 }
 0x70e   :  { %v2691_v50 = vadd.f32 %v4990_v61, %v2653_v9 }
 0x70f   :  { %2745 = vst.msk [vmem:[%s5225_s10 + $0xe8] sm:$0xff] %vm2715_vm3, %v2712_v14  ;;  %v2654_v57 = vadd.f32 %v2622_v21, %v4787_v6 }
 0x710   :  { %2724 = vst.msk [vmem:[%s5225_s10 + $0x40] sm:$0xff] %vm2715_vm3, %v2691_v50  ;;  %v2506_v45 = vpop.permute.xlu0 %2505  ;;  %v5284_v50 = vld [vmem:[#allocation12_spill] sm:$0xff] }
 0x711   :  { %v2692_v58 = vadd.f32 %v4990_v61, %v2654_v57  ;;  %v2623_v54 = vmul.f32 %v4930_v36, %v2506_v45 }
 0x712   :  { %v2511_v12 = vpop.permute.xlu1 %2510 }
 0x713   :  { %2725 = vst.msk [vmem:[%s5225_s10 + $0x48] sm:$0xff] %vm2715_vm3, %v2692_v58  ;;  %v2655_v41 = vadd.f32 %v2623_v54, %v4808_v31  ;;  %v2624_v51 = vmul.f32 %v4933_v37, %v2511_v12  ;;  %v5285_v58 = vld [vmem:[#allocation17_spill] sm:$0xff] }
 0x715   :  { %v2693_v24 = vadd.f32 %v4990_v61, %v2655_v41  ;;  %v2656_v22 = vadd.f32 %v2624_v51, %v4804_v0 }
 0x717   :  { %2726 = vst.msk [vmem:[%s5225_s10 + $0x50] sm:$0xff] %vm2715_vm3, %v2693_v24  ;;  %v2694_v6 = vadd.f32 %v4990_v61, %v2656_v22 }
 0x718   :  { %v2516_v36 = vpop.permute.xlu0 %2515 }
 0x719   :  { %2727 = vst.msk [vmem:[%s5225_s10 + $0x58] sm:$0xff] %vm2715_vm3, %v2694_v6  ;;  %v2625_v31 = vmul.f32 %v4939_v18, %v2516_v36  ;;  %v5276_v18 = vld [vmem:[#allocation15_spill] sm:$0xff] }
 0x71a   :  { %v2521_v37 = vpop.permute.xlu1 %2520 }
 0x71b   :  { %v2657_v59 = vadd.f32 %v2625_v31, %v4826_v47  ;;  %v2626_v0 = vmul.f32 %v4942_v1, %v2521_v37 }
 0x71d   :  { %v2695_v49 = vadd.f32 %v4990_v61, %v2657_v59  ;;  %v2658_v40 = vadd.f32 %v2626_v0, %v4822_v55 }
 0x71f   :  { %2728 = vst.msk [vmem:[%s5225_s10 + $0x60] sm:$0xff] %vm2715_vm3, %v2695_v49  ;;  %v2696_v2 = vadd.f32 %v4990_v61, %v2658_v40 }
 0x720   :  { %v2526_v48 = vpop.permute.xlu0 %2525 }
 0x721   :  { %2729 = vst.msk [vmem:[%s5225_s10 + $0x68] sm:$0xff] %vm2715_vm3, %v2696_v2  ;;  %v2627_v47 = vmul.f32 %v4947_v5, %v2526_v48 }
 0x722   :  { %v2531_v1 = vpop.permute.xlu1 %2530 }
 0x723   :  { %v2659_v16 = vadd.f32 %v2627_v47, %v5276_v18  ;;  %v2628_v55 = vmul.f32 %v5277_v13, %v2531_v1 }
 0x725   :  { %v2697_v20 = vadd.f32 %v4990_v61, %v2659_v16  ;;  %v2660_v44 = vadd.f32 %v2628_v55, %v5278_v38 }
 0x727   :  { %2730 = vst.msk [vmem:[%s5225_s10 + $0x70] sm:$0xff] %vm2715_vm3, %v2697_v20  ;;  %v2698_v7 = vadd.f32 %v4990_v61, %v2660_v44 }
 0x728   :  { %v2536_v8 = vpop.permute.xlu0 %2535 }
 0x729   :  { %2731 = vst.msk [vmem:[%s5225_s10 + $0x78] sm:$0xff] %vm2715_vm3, %v2698_v7  ;;  %v2629_v5 = vmul.f32 %v4955_v43, %v2536_v8 }
 0x72a   :  { %v2541_v15 = vpop.permute.xlu1 %2540 }
 0x72b   :  { %v2661_v56 = vadd.f32 %v2629_v5, %v5279_v25  ;;  %v2630_v53 = vmul.f32 %v4959_v11, %v2541_v15 }
 0x72d   :  { %v2699_v17 = vadd.f32 %v4990_v61, %v2661_v56  ;;  %v2662_v10 = vadd.f32 %v2630_v53, %v5280_v23 }
 0x72f   :  { %2732 = vst.msk [vmem:[%s5225_s10 + $0x80] sm:$0xff] %vm2715_vm3, %v2699_v17  ;;  %v2700_v26 = vadd.f32 %v4990_v61, %v2662_v10 }
 0x730   :  { %v2546_v63 = vpop.permute.xlu0 %2545 }
 0x731   :  { %2733 = vst.msk [vmem:[%s5225_s10 + $0x88] sm:$0xff] %vm2715_vm3, %v2700_v26  ;;  %v2631_v43 = vmul.f32 %v4963_v52, %v2546_v63 }
 0x732   :  { %v2551_v11 = vpop.permute.xlu1 %2550 }
 0x733   :  { %v2663_v62 = vadd.f32 %v2631_v43, %v5281_v19  ;;  %v2632_v33 = vmul.f32 %v4967_v39, %v2551_v11 }
 0x735   :  { %v2701_v34 = vadd.f32 %v4990_v61, %v2663_v62  ;;  %v2664_v29 = vadd.f32 %v2632_v33, %v5282_v32 }
 0x737   :  { %2734 = vst.msk [vmem:[%s5225_s10 + $0x90] sm:$0xff] %vm2715_vm3, %v2701_v34  ;;  %v2702_v46 = vadd.f32 %v4990_v61, %v2664_v29 }
 0x738   :  { %v2556_v60 = vpop.permute.xlu0 %2555 }
 0x739   :  { %2735 = vst.msk [vmem:[%s5225_s10 + $0x98] sm:$0xff] %vm2715_vm3, %v2702_v46  ;;  %v2633_v52 = vmul.f32 %v4971_v30, %v2556_v60 }
 0x73a   :  { %v2561_v39 = vpop.permute.xlu1 %2560 }
 0x73b   :  { %v2665_v3 = vadd.f32 %v2633_v52, %v5283_v35  ;;  %v2634_v9 = vmul.f32 %v4976_v28, %v2561_v39 }
 0x73c   :  { %v2606_v27 = vpop.permute.xlu0 %2605 }
 0x73d   :  { %v2703_v14 = vadd.f32 %v4990_v61, %v2665_v3  ;;  %v2666_v21 = vadd.f32 %v2634_v9, %v5284_v50  ;;  %v2643_v57 = vmul.f32 %v4918_v4, %v2606_v27  ;;  %v5286_v4 = vld [vmem:[#allocation16_spill] sm:$0xff] }
 0x73e   :  { %v2611_v45 = vpop.permute.xlu1 %2610 }
 0x73f   :  { %2736 = vst.msk [vmem:[%s5225_s10 + $0xa0] sm:$0xff] %vm2715_vm3, %v2703_v14  ;;  %v2704_v30 = vadd.f32 %v4990_v61, %v2666_v21  ;;  %v2675_v54 = vadd.f32 %v2643_v57, %v5285_v58  ;;  %v2644_v12 = vmul.f32 %v4925_v42, %v2611_v45 }
 0x741   :  { %2737 = vst.msk [vmem:[%s5225_s10 + $0xa8] sm:$0xff] %vm2715_vm3, %v2704_v30  ;;  %v2713_v28 = vadd.f32 %v4990_v61, %v2675_v54  ;;  %v2676_v41 = vadd.f32 %v2644_v12, %v5286_v4 }
 0x743   :  { %2746 = vst.msk [vmem:[%s5225_s10 + $0xf0] sm:$0xff] %vm2715_vm3, %v2713_v28  ;;  %v2714_v51 = vadd.f32 %v4990_v61, %v2676_v41 }
 0x745   :  { %2747 = vst.msk [vmem:[%s5225_s10 + $0xf8] sm:$0xff] %vm2715_vm3, %v2714_v51 }
 0x746   :  { %2752 = vsyncpa [#allocation3], 1 }
 0x747   :  { %2753 = vsyncpa [#allocation5], 1 }

</bundles_post_ra>
